<compile_context>
chip_gen: v7x
topology: tpu7x:2x2x1
jax: 0.10.0
libtpu: 0.0.40
codegen_flags: <defaults>
</compile_context>

<pallas_src>
import functools

import jax
import jax.numpy as jnp
from jax import lax
from jax.experimental import pallas as pl
from jax.experimental.pallas import tpu as pltpu

LANE = 128
SUBLANE = 8


def _round_up(n, m):
    return ((n + m - 1) // m) * m


def _lstm_kernel(x_ref, h0_ref, c0_ref, w_ih_ref, w_hh_ref, b_ref,
                 w_fc_ref, b_fc_ref, out_ref, hn_ref, cn_ref,
                 h_scr, c_scr, xproj_scr,
                 *, seq_len, chunk, needs_mask, unroll):
    # x_ref:      (Tt, Bblk, Ip)   bf16   time-major chunk
    # h0/c0:      (Bblk, Hp)       f32
    # w_ih_ref:   (Ip, 4*Hp)       bf16   fused gate weights, order i|f|g|o
    # w_hh_ref:   (Hp, 4*Hp)       bf16
    # b_ref:      (1, 4*Hp)        f32    (b_ih + b_hh)
    # w_fc_ref:   (Hp, Op)         bf16
    # b_fc_ref:   (1, Op)          f32
    # h_scr/c_scr:(Bblk, Hp)       f32    state carried across time chunks
    # xproj_scr:  (Tt*Bblk, 4*Hp)  f32    hoisted input projection
    t_blk = pl.program_id(1)
    Bblk, Hp = h_scr.shape
    Ip = x_ref.shape[-1]

    @pl.when(t_blk == 0)
    def _init():
        h_scr[...] = h0_ref[...]
        c_scr[...] = c0_ref[...]

    # Input projection hoisted out of the recurrence: one fused GEMM for the
    # whole chunk, bias folded in once, result parked in VMEM scratch.
    x2d = x_ref[...].reshape(chunk * Bblk, Ip)
    xproj_scr[...] = (jnp.dot(x2d, w_ih_ref[...],
                              preferred_element_type=jnp.float32)
                      + b_ref[...])

    w_hh = w_hh_ref[...]                                  # bf16, resident

    def step(t, carry):
        h, c = carry
        row = pl.multiple_of(t * Bblk, Bblk)
        gates = (xproj_scr[pl.ds(row, Bblk), :]
                 + jnp.dot(h.astype(w_hh.dtype), w_hh,
                           preferred_element_type=jnp.float32))   # (Bblk, 4Hp)
        # sigmoid(x) = 0.5*tanh(0.5*x) + 0.5  -> one EUP op per gate.
        i_g = 0.5 * jnp.tanh(0.5 * gates[:, 0 * Hp:1 * Hp]) + 0.5
        f_g = 0.5 * jnp.tanh(0.5 * gates[:, 1 * Hp:2 * Hp]) + 0.5
        g_g = jnp.tanh(gates[:, 2 * Hp:3 * Hp])
        o_g = 0.5 * jnp.tanh(0.5 * gates[:, 3 * Hp:4 * Hp]) + 0.5
        c_new = f_g * c + i_g * g_g
        h_new = o_g * jnp.tanh(c_new)
        if needs_mask:
            valid = (t_blk * chunk + t) < seq_len
            c_new = jnp.where(valid, c_new, c)
            h_new = jnp.where(valid, h_new, h)
        return h_new, c_new

    h, c = lax.fori_loop(0, chunk, step, (h_scr[...], c_scr[...]),
                         unroll=unroll)

    h_scr[...] = h
    c_scr[...] = c

    @pl.when(t_blk == pl.num_programs(1) - 1)
    def _finalize():
        hn_ref[...] = h
        cn_ref[...] = c
        w_fc = w_fc_ref[...]
        out_ref[...] = (jnp.dot(h.astype(w_fc.dtype), w_fc,
                                preferred_element_type=jnp.float32)
                        + b_fc_ref[...])


def init_params(key, input_size, hidden_size, output_size):
    """PyTorch-style uniform(-1/sqrt(H), 1/sqrt(H)) init; packed/padded for the
    kernel plus raw f32 copies for the pure-JAX reference."""
    H, I, O = hidden_size, input_size, output_size
    k = 1.0 / (H ** 0.5)
    ks = jax.random.split(key, 6)
    w_ih = jax.random.uniform(ks[0], (4 * H, I), minval=-k, maxval=k, dtype=jnp.float32)
    w_hh = jax.random.uniform(ks[1], (4 * H, H), minval=-k, maxval=k, dtype=jnp.float32)
    b_ih = jax.random.uniform(ks[2], (4 * H,), minval=-k, maxval=k, dtype=jnp.float32)
    b_hh = jax.random.uniform(ks[3], (4 * H,), minval=-k, maxval=k, dtype=jnp.float32)
    w_fc = jax.random.uniform(ks[4], (O, H), minval=-k, maxval=k, dtype=jnp.float32)
    b_fc = jax.random.uniform(ks[5], (O,), minval=-k, maxval=k, dtype=jnp.float32)

    Ip = _round_up(I, LANE)
    Hp = _round_up(H, LANE)
    Op = _round_up(O, LANE)

    # Fused, transposed, zero-padded gate weights; columns are [i|f|g|o],
    # each gate block exactly Hp lanes wide.
    w_ih_g = jnp.transpose(w_ih.reshape(4, H, I), (0, 2, 1))       # (4, I, H)
    w_ih_g = jnp.pad(w_ih_g, ((0, 0), (0, Ip - I), (0, Hp - H)))   # (4, Ip, Hp)
    w_ih_f = jnp.transpose(w_ih_g, (1, 0, 2)).reshape(Ip, 4 * Hp)

    w_hh_g = jnp.transpose(w_hh.reshape(4, H, H), (0, 2, 1))
    w_hh_g = jnp.pad(w_hh_g, ((0, 0), (0, Hp - H), (0, Hp - H)))
    w_hh_f = jnp.transpose(w_hh_g, (1, 0, 2)).reshape(Hp, 4 * Hp)

    b_g = (b_ih + b_hh).reshape(4, H)
    b_f = jnp.pad(b_g, ((0, 0), (0, Hp - H))).reshape(1, 4 * Hp)

    w_fc_p = jnp.pad(w_fc.T, ((0, Hp - H), (0, Op - O)))
    b_fc_p = jnp.pad(b_fc, (0, Op - O)).reshape(1, Op)

    return {
        "w_ih": w_ih_f.astype(jnp.bfloat16),   # (Ip, 4Hp)
        "w_hh": w_hh_f.astype(jnp.bfloat16),   # (Hp, 4Hp)
        "b": b_f,                              # (1, 4Hp) f32
        "w_fc": w_fc_p.astype(jnp.bfloat16),   # (Hp, Op)
        "b_fc": b_fc_p,                        # (1, Op) f32
        "dims": (I, H, O, Ip, Hp, Op),
        "raw": {"w_ih": w_ih, "w_hh": w_hh, "b_ih": b_ih, "b_hh": b_hh,
                "w_fc": w_fc, "b_fc": b_fc},
    }


def lstm_forward(x, h0, c0, params, *, max_chunk=64, batch_block=None, unroll=8):
    """x: (B, T, I) batch-first; h0/c0: (1, B, H). Returns (out, (h_n, c_n)).

    batch_block: optional padded-batch block size; leave None (full batch in
    one block) on v5e/v6e, set e.g. Bp//2 on v7x to use its second TensorCore.
    """
    B, T, I = x.shape
    H = h0.shape[-1]
    I_, H_, O, Ip, Hp, Op = params["dims"]
    assert (I, H) == (I_, H_)

    Bp = _round_up(B, SUBLANE)
    if batch_block is None:
        Bblk = Bp
    else:
        Bblk = max(SUBLANE, _round_up(min(batch_block, Bp), SUBLANE))
        Bp = _round_up(Bp, Bblk)
    n_b = Bp // Bblk

    Tt = min(T, max_chunk)            # short sequences -> single grid step
    Tp = _round_up(T, Tt)             # pad T instead of requiring divisibility
    n_chunks = Tp // Tt
    needs_mask = (Tp != T)

    # Time-major, zero-padded, bf16 matmul operand (cast first: fewer bytes).
    x_tm = jnp.transpose(x.astype(jnp.bfloat16), (1, 0, 2))             # (T, B, I)
    x_p = jnp.pad(x_tm, ((0, Tp - T), (0, Bp - B), (0, Ip - I)))        # (Tp, Bp, Ip)
    # h0/c0 must be zero-padded: the padded-lane exactness argument relies on it.
    h0_p = jnp.pad(h0.reshape(B, H).astype(jnp.float32), ((0, Bp - B), (0, Hp - H)))
    c0_p = jnp.pad(c0.reshape(B, H).astype(jnp.float32), ((0, Bp - B), (0, Hp - H)))

    kernel = functools.partial(
        _lstm_kernel, seq_len=T, chunk=Tt, needs_mask=needs_mask,
        unroll=min(unroll, Tt))

    const = lambda b, t: (0, 0)
    grid_spec = pltpu.PrefetchScalarGridSpec(
        num_scalar_prefetch=0,
        grid=(n_b, n_chunks),
        in_specs=[
            pl.BlockSpec((Tt, Bblk, Ip), lambda b, t: (t, b, 0)),  # x chunk
            pl.BlockSpec((Bblk, Hp), lambda b, t: (b, 0)),         # h0
            pl.BlockSpec((Bblk, Hp), lambda b, t: (b, 0)),         # c0
            pl.BlockSpec((Ip, 4 * Hp), const),                     # w_ih (resident)
            pl.BlockSpec((Hp, 4 * Hp), const),                     # w_hh (resident)
            pl.BlockSpec((1, 4 * Hp), const),                      # bias
            pl.BlockSpec((Hp, Op), const),                         # w_fc
            pl.BlockSpec((1, Op), const),                          # b_fc
        ],
        out_specs=(
            pl.BlockSpec((Bblk, Op), lambda b, t: (b, 0)),         # out (last step)
            pl.BlockSpec((Bblk, Hp), lambda b, t: (b, 0)),         # h_n
            pl.BlockSpec((Bblk, Hp), lambda b, t: (b, 0)),         # c_n
        ),
        scratch_shapes=[
            pltpu.VMEM((Bblk, Hp), jnp.float32),                   # carried h
            pltpu.VMEM((Bblk, Hp), jnp.float32),                   # carried c
            pltpu.VMEM((Tt * Bblk, 4 * Hp), jnp.float32),          # x projection
        ],
    )

    # Rough VMEM budget (double-buffered inputs/outputs + scratch), clamped to
    # a range that is safe on v5e/v6e (128 MiB) and v7x (64 MiB physical).
    est = (2 * Tt * Bblk * Ip * 2
           + 2 * (Ip + Hp) * 4 * Hp * 2
           + 2 * Hp * Op * 2
           + 2 * (4 * Hp + Op) * 4
           + 2 * 2 * Bblk * Hp * 4
           + 2 * (Bblk * Op + 2 * Bblk * Hp) * 4
           + (2 * Bblk * Hp + Tt * Bblk * 4 * Hp) * 4)
    vmem_limit = int(max(32 * 1024 * 1024, min(64 * 1024 * 1024, 2 * est)))

    out_p, hn_p, cn_p = pl.pallas_call(
        kernel,
        out_shape=(jax.ShapeDtypeStruct((Bp, Op), jnp.float32),
                   jax.ShapeDtypeStruct((Bp, Hp), jnp.float32),
                   jax.ShapeDtypeStruct((Bp, Hp), jnp.float32)),
        grid_spec=grid_spec,
        compiler_params=pltpu.CompilerParams(
            dimension_semantics=("parallel", "arbitrary"),
            vmem_limit_bytes=vmem_limit),
    )(x_p, h0_p, c0_p,
      params["w_ih"], params["w_hh"], params["b"],
      params["w_fc"], params["b_fc"])

    out = out_p[:B, :O]
    hn = hn_p[:B, :H].reshape(1, B, H)
    cn = cn_p[:B, :H].reshape(1, B, H)
    return out, (hn, cn)


def lstm_reference(x, h0, c0, raw):
    """Pure-JAX f32 reference matching torch nn.LSTM (gate order i|f|g|o) + Linear."""
    w_ih, w_hh, b_ih, b_hh, w_fc, b_fc = (raw[k] for k in
                                          ("w_ih", "w_hh", "b_ih", "b_hh",
                                           "w_fc", "b_fc"))
    B = x.shape[0]
    H = w_hh.shape[1]
    h = h0.reshape(B, H)
    c = c0.reshape(B, H)

    def step(carry, xt):
        h, c = carry
        gates = xt @ w_ih.T + b_ih + h @ w_hh.T + b_hh
        i, f, g, o = jnp.split(gates, 4, axis=-1)
        i, f, o = jax.nn.sigmoid(i), jax.nn.sigmoid(f), jax.nn.sigmoid(o)
        g = jnp.tanh(g)
        c = f * c + i * g
        h = o * jnp.tanh(c)
        return (h, c), None

    (h, c), _ = lax.scan(step, (h, c), jnp.transpose(x, (1, 0, 2)))
    out = h @ w_fc.T + b_fc
    return out, h, c


if __name__ == "__main__":
    input_size = 13
    hidden_size = 3
    output_size = 1
    num_layers = 1
    batch = 2
    seq = 8

    key = jax.random.PRNGKey(0)
    k_x, k_h, k_c, k_p = jax.random.split(key, 4)

    x = jax.random.normal(k_x, (batch, seq, input_size), dtype=jnp.float32)
    # The torch module draws randn h0/c0 inside forward(); drawn deterministically here.
    h0 = jax.random.normal(k_h, (num_layers, batch, hidden_size), dtype=jnp.float32)
    c0 = jax.random.normal(k_c, (num_layers, batch, hidden_size), dtype=jnp.float32)

    params = init_params(k_p, input_size, hidden_size, output_size)

    out, (hn, cn) = lstm_forward(x, h0, c0, params)
    jax.block_until_ready((out, hn, cn))

    # Correctness vs. pure-JAX f32 reference (bf16 matmul operands => loose tol).
    out_r, hn_r, cn_r = lstm_reference(x, h0, c0, params["raw"])

    assert out.shape == (batch, output_size)
    assert hn.shape == (num_layers, batch, hidden_size)
    assert cn.shape == (num_layers, batch, hidden_size)
    assert bool(jnp.all(jnp.isfinite(out)))
    assert bool(jnp.allclose(out, out_r, atol=5e-2, rtol=5e-2))
    assert bool(jnp.allclose(hn, hn_r.reshape(1, batch, hidden_size), atol=5e-2, rtol=5e-2))
    assert bool(jnp.allclose(cn, cn_r.reshape(1, batch, hidden_size), atol=5e-2, rtol=5e-2))
    print("KERNEL_OK")
</pallas_src>

<mosaic_0001>
module attributes {stable_mosaic.version = 11 : i64} {
  func.func @_lstm_kernel(%arg0: i32, %arg1: i32, %arg2: memref<8x8x128xbf16, #tpu.memory_space<vmem>>, %arg3: memref<8x128xf32, #tpu.memory_space<vmem>>, %arg4: memref<8x128xf32, #tpu.memory_space<vmem>>, %arg5: memref<128x512xbf16, #tpu.memory_space<vmem>>, %arg6: memref<128x512xbf16, #tpu.memory_space<vmem>>, %arg7: memref<1x512xf32, #tpu.memory_space<vmem>>, %arg8: memref<128x128xbf16, #tpu.memory_space<vmem>>, %arg9: memref<1x128xf32, #tpu.memory_space<vmem>>, %arg10: memref<8x128xf32, #tpu.memory_space<vmem>>, %arg11: memref<8x128xf32, #tpu.memory_space<vmem>>, %arg12: memref<8x128xf32, #tpu.memory_space<vmem>>, %arg13: memref<8x128xf32, #tpu.memory_space<vmem>>, %arg14: memref<8x128xf32, #tpu.memory_space<vmem>>, %arg15: memref<64x512xf32, #tpu.memory_space<vmem>>) attributes {dimension_semantics = [#tpu.dimension_semantics<parallel>, #tpu.dimension_semantics<arbitrary>], iteration_bounds = array<i64: 1, 1>, scalar_prefetch = 0 : i64, scratch_operands = 3 : i64, tpu.core_type = #tpu.core_type<tc>, window_params = [{transform_indices = @transform_0, window_bounds = array<i64: 8, 8, 128>}, {transform_indices = @transform_1, window_bounds = array<i64: 8, 128>}, {transform_indices = @transform_2, window_bounds = array<i64: 8, 128>}, {pipeline_mode = #tpu.pipeline_mode<synchronous>, transform_indices = @transform_3, window_bounds = array<i64: 128, 512>}, {pipeline_mode = #tpu.pipeline_mode<synchronous>, transform_indices = @transform_4, window_bounds = array<i64: 128, 512>}, {pipeline_mode = #tpu.pipeline_mode<synchronous>, transform_indices = @transform_5, window_bounds = array<i64: 1, 512>}, {pipeline_mode = #tpu.pipeline_mode<synchronous>, transform_indices = @transform_6, window_bounds = array<i64: 128, 128>}, {pipeline_mode = #tpu.pipeline_mode<synchronous>, transform_indices = @transform_7, window_bounds = array<i64: 1, 128>}, {transform_indices = @transform_8, window_bounds = array<i64: 8, 128>}, {transform_indices = @transform_9, window_bounds = array<i64: 8, 128>}, {transform_indices = @transform_10, window_bounds = array<i64: 8, 128>}]} {
    %c0_i32 = arith.constant 0 : i32
    %0 = arith.cmpi eq, %arg1, %c0_i32 : i32
    %1 = arith.extui %0 : i1 to i32
    %c0_i32_0 = arith.constant 0 : i32
    %2 = arith.cmpi ne, %1, %c0_i32_0 : i32
    scf.if %2 {
      %c0_118 = arith.constant 0 : index
      %c0_119 = arith.constant 0 : index
      %323 = vector.load %arg3[%c0_118, %c0_119] : memref<8x128xf32, #tpu.memory_space<vmem>>, vector<8x128xf32>
      %c0_120 = arith.constant 0 : index
      %c0_121 = arith.constant 0 : index
      %324 = vector.load %arg13[%c0_120, %c0_121] : memref<8x128xf32, #tpu.memory_space<vmem>>, vector<8x128xf32>
      tpu.vector_store %arg13[%c0_120, %c0_121], %323 {strides = array<i32>} : memref<8x128xf32, #tpu.memory_space<vmem>>, vector<8x128xf32>,
      %c0_122 = arith.constant 0 : index
      %c0_123 = arith.constant 0 : index
      %325 = vector.load %arg4[%c0_122, %c0_123] : memref<8x128xf32, #tpu.memory_space<vmem>>, vector<8x128xf32>
      %c0_124 = arith.constant 0 : index
      %c0_125 = arith.constant 0 : index
      %326 = vector.load %arg14[%c0_124, %c0_125] : memref<8x128xf32, #tpu.memory_space<vmem>>, vector<8x128xf32>
      tpu.vector_store %arg14[%c0_124, %c0_125], %325 {strides = array<i32>} : memref<8x128xf32, #tpu.memory_space<vmem>>, vector<8x128xf32>,
    } else {
    }
    %c0 = arith.constant 0 : index
    %c0_1 = arith.constant 0 : index
    %c0_2 = arith.constant 0 : index
    %3 = vector.load %arg2[%c0, %c0_1, %c0_2] : memref<8x8x128xbf16, #tpu.memory_space<vmem>>, vector<8x8x128xbf16>
    %4 = vector.shape_cast %3 : vector<8x8x128xbf16> to vector<64x128xbf16>
    %c0_3 = arith.constant 0 : index
    %c0_4 = arith.constant 0 : index
    %5 = vector.load %arg5[%c0_3, %c0_4] : memref<128x512xbf16, #tpu.memory_space<vmem>>, vector<128x512xbf16>
    %cst = arith.constant dense<0.000000e+00> : vector<64x512xf32>
    %6 = tpu.matmul %4, %5, %cst {dimension_numbers = #tpu.dot_dimension_numbers<[1], [0], [0], [1], [0, 0, 1, 1], [], []>} : vector<64x128xbf16>, vector<128x512xbf16>, vector<64x512xf32> -> vector<64x512xf32>
    %c0_5 = arith.constant 0 : index
    %c0_6 = arith.constant 0 : index
    %7 = vector.load %arg7[%c0_5, %c0_6] : memref<1x512xf32, #tpu.memory_space<vmem>>, vector<1x512xf32>
    %8 = vector.broadcast %7 : vector<1x512xf32> to vector<64x512xf32>
    %9 = arith.addf %6, %8 : vector<64x512xf32>
    %c0_7 = arith.constant 0 : index
    %c0_8 = arith.constant 0 : index
    %10 = vector.load %arg15[%c0_7, %c0_8] : memref<64x512xf32, #tpu.memory_space<vmem>>, vector<64x512xf32>
    tpu.vector_store %arg15[%c0_7, %c0_8], %9 {strides = array<i32>} : memref<64x512xf32, #tpu.memory_space<vmem>>, vector<64x512xf32>,
    %c0_9 = arith.constant 0 : index
    %c0_10 = arith.constant 0 : index
    %11 = vector.load %arg6[%c0_9, %c0_10] : memref<128x512xbf16, #tpu.memory_space<vmem>>, vector<128x512xbf16>
    %c0_11 = arith.constant 0 : index
    %c0_12 = arith.constant 0 : index
    %12 = vector.load %arg13[%c0_11, %c0_12] : memref<8x128xf32, #tpu.memory_space<vmem>>, vector<8x128xf32>
    %c0_13 = arith.constant 0 : index
    %c0_14 = arith.constant 0 : index
    %13 = vector.load %arg14[%c0_13, %c0_14] : memref<8x128xf32, #tpu.memory_space<vmem>>, vector<8x128xf32>
    %c0_i32_15 = arith.constant 0 : i32
    %c8_i32 = arith.constant 8 : i32
    %14 = arith.muli %c0_i32_15, %c8_i32 : i32
    %15 = tpu.assume_multiple %14, 8 : i32
    %16 = arith.index_cast %15 : i32 to index
    %c0_16 = arith.constant 0 : index
    %17 = vector.load %arg15[%16, %c0_16] : memref<64x512xf32, #tpu.memory_space<vmem>>, vector<8x512xf32>
    %18 = arith.truncf %12 : vector<8x128xf32> to vector<8x128xbf16>
    %cst_17 = arith.constant dense<0.000000e+00> : vector<8x512xf32>
    %19 = tpu.matmul %18, %11, %cst_17 {dimension_numbers = #tpu.dot_dimension_numbers<[1], [0], [0], [1], [0, 0, 1, 1], [], []>} : vector<8x128xbf16>, vector<128x512xbf16>, vector<8x512xf32> -> vector<8x512xf32>
    %20 = arith.addf %17, %19 : vector<8x512xf32>
    %21 = vector.extract_strided_slice %20 {offsets = [0, 0], sizes = [8, 128], strides = [1, 1]} : vector<8x512xf32> to vector<8x128xf32>
    %cst_18 = arith.constant 5.000000e-01 : f32
    %22 = vector.broadcast %cst_18 : f32 to vector<8x128xf32>
    %23 = arith.mulf %22, %21 : vector<8x128xf32>
    %24 = math.tanh %23 : vector<8x128xf32>
    %cst_19 = arith.constant 5.000000e-01 : f32
    %25 = vector.broadcast %cst_19 : f32 to vector<8x128xf32>
    %26 = arith.mulf %25, %24 : vector<8x128xf32>
    %cst_20 = arith.constant 5.000000e-01 : f32
    %27 = vector.broadcast %cst_20 : f32 to vector<8x128xf32>
    %28 = arith.addf %26, %27 : vector<8x128xf32>
    %29 = vector.extract_strided_slice %20 {offsets = [0, 128], sizes = [8, 128], strides = [1, 1]} : vector<8x512xf32> to vector<8x128xf32>
    %cst_21 = arith.constant 5.000000e-01 : f32
    %30 = vector.broadcast %cst_21 : f32 to vector<8x128xf32>
    %31 = arith.mulf %30, %29 : vector<8x128xf32>
    %32 = math.tanh %31 : vector<8x128xf32>
    %cst_22 = arith.constant 5.000000e-01 : f32
    %33 = vector.broadcast %cst_22 : f32 to vector<8x128xf32>
    %34 = arith.mulf %33, %32 : vector<8x128xf32>
    %cst_23 = arith.constant 5.000000e-01 : f32
    %35 = vector.broadcast %cst_23 : f32 to vector<8x128xf32>
    %36 = arith.addf %34, %35 : vector<8x128xf32>
    %37 = vector.extract_strided_slice %20 {offsets = [0, 256], sizes = [8, 128], strides = [1, 1]} : vector<8x512xf32> to vector<8x128xf32>
    %38 = math.tanh %37 : vector<8x128xf32>
    %39 = vector.extract_strided_slice %20 {offsets = [0, 384], sizes = [8, 128], strides = [1, 1]} : vector<8x512xf32> to vector<8x128xf32>
    %cst_24 = arith.constant 5.000000e-01 : f32
    %40 = vector.broadcast %cst_24 : f32 to vector<8x128xf32>
    %41 = arith.mulf %40, %39 : vector<8x128xf32>
    %42 = math.tanh %41 : vector<8x128xf32>
    %cst_25 = arith.constant 5.000000e-01 : f32
    %43 = vector.broadcast %cst_25 : f32 to vector<8x128xf32>
    %44 = arith.mulf %43, %42 : vector<8x128xf32>
    %cst_26 = arith.constant 5.000000e-01 : f32
    %45 = vector.broadcast %cst_26 : f32 to vector<8x128xf32>
    %46 = arith.addf %44, %45 : vector<8x128xf32>
    %47 = arith.mulf %36, %13 : vector<8x128xf32>
    %48 = arith.mulf %28, %38 : vector<8x128xf32>
    %49 = arith.addf %47, %48 : vector<8x128xf32>
    %50 = math.tanh %49 : vector<8x128xf32>
    %51 = arith.mulf %46, %50 : vector<8x128xf32>
    %c1_i32 = arith.constant 1 : i32
    %c8_i32_27 = arith.constant 8 : i32
    %52 = arith.muli %c1_i32, %c8_i32_27 : i32
    %53 = tpu.assume_multiple %52, 8 : i32
    %54 = arith.index_cast %53 : i32 to index
    %c0_28 = arith.constant 0 : index
    %55 = vector.load %arg15[%54, %c0_28] : memref<64x512xf32, #tpu.memory_space<vmem>>, vector<8x512xf32>
    %56 = arith.truncf %51 : vector<8x128xf32> to vector<8x128xbf16>
    %cst_29 = arith.constant dense<0.000000e+00> : vector<8x512xf32>
    %57 = tpu.matmul %56, %11, %cst_29 {dimension_numbers = #tpu.dot_dimension_numbers<[1], [0], [0], [1], [0, 0, 1, 1], [], []>} : vector<8x128xbf16>, vector<128x512xbf16>, vector<8x512xf32> -> vector<8x512xf32>
    %58 = arith.addf %55, %57 : vector<8x512xf32>
    %59 = vector.extract_strided_slice %58 {offsets = [0, 0], sizes = [8, 128], strides = [1, 1]} : vector<8x512xf32> to vector<8x128xf32>
    %cst_30 = arith.constant 5.000000e-01 : f32
    %60 = vector.broadcast %cst_30 : f32 to vector<8x128xf32>
    %61 = arith.mulf %60, %59 : vector<8x128xf32>
    %62 = math.tanh %61 : vector<8x128xf32>
    %cst_31 = arith.constant 5.000000e-01 : f32
    %63 = vector.broadcast %cst_31 : f32 to vector<8x128xf32>
    %64 = arith.mulf %63, %62 : vector<8x128xf32>
    %cst_32 = arith.constant 5.000000e-01 : f32
    %65 = vector.broadcast %cst_32 : f32 to vector<8x128xf32>
    %66 = arith.addf %64, %65 : vector<8x128xf32>
    %67 = vector.extract_strided_slice %58 {offsets = [0, 128], sizes = [8, 128], strides = [1, 1]} : vector<8x512xf32> to vector<8x128xf32>
    %cst_33 = arith.constant 5.000000e-01 : f32
    %68 = vector.broadcast %cst_33 : f32 to vector<8x128xf32>
    %69 = arith.mulf %68, %67 : vector<8x128xf32>
    %70 = math.tanh %69 : vector<8x128xf32>
    %cst_34 = arith.constant 5.000000e-01 : f32
    %71 = vector.broadcast %cst_34 : f32 to vector<8x128xf32>
    %72 = arith.mulf %71, %70 : vector<8x128xf32>
    %cst_35 = arith.constant 5.000000e-01 : f32
    %73 = vector.broadcast %cst_35 : f32 to vector<8x128xf32>
    %74 = arith.addf %72, %73 : vector<8x128xf32>
    %75 = vector.extract_strided_slice %58 {offsets = [0, 256], sizes = [8, 128], strides = [1, 1]} : vector<8x512xf32> to vector<8x128xf32>
    %76 = math.tanh %75 : vector<8x128xf32>
    %77 = vector.extract_strided_slice %58 {offsets = [0, 384], sizes = [8, 128], strides = [1, 1]} : vector<8x512xf32> to vector<8x128xf32>
    %cst_36 = arith.constant 5.000000e-01 : f32
    %78 = vector.broadcast %cst_36 : f32 to vector<8x128xf32>
    %79 = arith.mulf %78, %77 : vector<8x128xf32>
    %80 = math.tanh %79 : vector<8x128xf32>
    %cst_37 = arith.constant 5.000000e-01 : f32
    %81 = vector.broadcast %cst_37 : f32 to vector<8x128xf32>
    %82 = arith.mulf %81, %80 : vector<8x128xf32>
    %cst_38 = arith.constant 5.000000e-01 : f32
    %83 = vector.broadcast %cst_38 : f32 to vector<8x128xf32>
    %84 = arith.addf %82, %83 : vector<8x128xf32>
    %85 = arith.mulf %74, %49 : vector<8x128xf32>
    %86 = arith.mulf %66, %76 : vector<8x128xf32>
    %87 = arith.addf %85, %86 : vector<8x128xf32>
    %88 = math.tanh %87 : vector<8x128xf32>
    %89 = arith.mulf %84, %88 : vector<8x128xf32>
    %c2_i32 = arith.constant 2 : i32
    %c8_i32_39 = arith.constant 8 : i32
    %90 = arith.muli %c2_i32, %c8_i32_39 : i32
    %91 = tpu.assume_multiple %90, 8 : i32
    %92 = arith.index_cast %91 : i32 to index
    %c0_40 = arith.constant 0 : index
    %93 = vector.load %arg15[%92, %c0_40] : memref<64x512xf32, #tpu.memory_space<vmem>>, vector<8x512xf32>
    %94 = arith.truncf %89 : vector<8x128xf32> to vector<8x128xbf16>
    %cst_41 = arith.constant dense<0.000000e+00> : vector<8x512xf32>
    %95 = tpu.matmul %94, %11, %cst_41 {dimension_numbers = #tpu.dot_dimension_numbers<[1], [0], [0], [1], [0, 0, 1, 1], [], []>} : vector<8x128xbf16>, vector<128x512xbf16>, vector<8x512xf32> -> vector<8x512xf32>
    %96 = arith.addf %93, %95 : vector<8x512xf32>
    %97 = vector.extract_strided_slice %96 {offsets = [0, 0], sizes = [8, 128], strides = [1, 1]} : vector<8x512xf32> to vector<8x128xf32>
    %cst_42 = arith.constant 5.000000e-01 : f32
    %98 = vector.broadcast %cst_42 : f32 to vector<8x128xf32>
    %99 = arith.mulf %98, %97 : vector<8x128xf32>
    %100 = math.tanh %99 : vector<8x128xf32>
    %cst_43 = arith.constant 5.000000e-01 : f32
    %101 = vector.broadcast %cst_43 : f32 to vector<8x128xf32>
    %102 = arith.mulf %101, %100 : vector<8x128xf32>
    %cst_44 = arith.constant 5.000000e-01 : f32
    %103 = vector.broadcast %cst_44 : f32 to vector<8x128xf32>
    %104 = arith.addf %102, %103 : vector<8x128xf32>
    %105 = vector.extract_strided_slice %96 {offsets = [0, 128], sizes = [8, 128], strides = [1, 1]} : vector<8x512xf32> to vector<8x128xf32>
    %cst_45 = arith.constant 5.000000e-01 : f32
    %106 = vector.broadcast %cst_45 : f32 to vector<8x128xf32>
    %107 = arith.mulf %106, %105 : vector<8x128xf32>
    %108 = math.tanh %107 : vector<8x128xf32>
    %cst_46 = arith.constant 5.000000e-01 : f32
    %109 = vector.broadcast %cst_46 : f32 to vector<8x128xf32>
    %110 = arith.mulf %109, %108 : vector<8x128xf32>
    %cst_47 = arith.constant 5.000000e-01 : f32
    %111 = vector.broadcast %cst_47 : f32 to vector<8x128xf32>
    %112 = arith.addf %110, %111 : vector<8x128xf32>
    %113 = vector.extract_strided_slice %96 {offsets = [0, 256], sizes = [8, 128], strides = [1, 1]} : vector<8x512xf32> to vector<8x128xf32>
    %114 = math.tanh %113 : vector<8x128xf32>
    %115 = vector.extract_strided_slice %96 {offsets = [0, 384], sizes = [8, 128], strides = [1, 1]} : vector<8x512xf32> to vector<8x128xf32>
    %cst_48 = arith.constant 5.000000e-01 : f32
    %116 = vector.broadcast %cst_48 : f32 to vector<8x128xf32>
    %117 = arith.mulf %116, %115 : vector<8x128xf32>
    %118 = math.tanh %117 : vector<8x128xf32>
    %cst_49 = arith.constant 5.000000e-01 : f32
    %119 = vector.broadcast %cst_49 : f32 to vector<8x128xf32>
    %120 = arith.mulf %119, %118 : vector<8x128xf32>
    %cst_50 = arith.constant 5.000000e-01 : f32
    %121 = vector.broadcast %cst_50 : f32 to vector<8x128xf32>
    %122 = arith.addf %120, %121 : vector<8x128xf32>
    %123 = arith.mulf %112, %87 : vector<8x128xf32>
    %124 = arith.mulf %104, %114 : vector<8x128xf32>
    %125 = arith.addf %123, %124 : vector<8x128xf32>
    %126 = math.tanh %125 : vector<8x128xf32>
    %127 = arith.mulf %122, %126 : vector<8x128xf32>
    %c3_i32 = arith.constant 3 : i32
    %c8_i32_51 = arith.constant 8 : i32
    %128 = arith.muli %c3_i32, %c8_i32_51 : i32
    %129 = tpu.assume_multiple %128, 8 : i32
    %130 = arith.index_cast %129 : i32 to index
    %c0_52 = arith.constant 0 : index
    %131 = vector.load %arg15[%130, %c0_52] : memref<64x512xf32, #tpu.memory_space<vmem>>, vector<8x512xf32>
    %132 = arith.truncf %127 : vector<8x128xf32> to vector<8x128xbf16>
    %cst_53 = arith.constant dense<0.000000e+00> : vector<8x512xf32>
    %133 = tpu.matmul %132, %11, %cst_53 {dimension_numbers = #tpu.dot_dimension_numbers<[1], [0], [0], [1], [0, 0, 1, 1], [], []>} : vector<8x128xbf16>, vector<128x512xbf16>, vector<8x512xf32> -> vector<8x512xf32>
    %134 = arith.addf %131, %133 : vector<8x512xf32>
    %135 = vector.extract_strided_slice %134 {offsets = [0, 0], sizes = [8, 128], strides = [1, 1]} : vector<8x512xf32> to vector<8x128xf32>
    %cst_54 = arith.constant 5.000000e-01 : f32
    %136 = vector.broadcast %cst_54 : f32 to vector<8x128xf32>
    %137 = arith.mulf %136, %135 : vector<8x128xf32>
    %138 = math.tanh %137 : vector<8x128xf32>
    %cst_55 = arith.constant 5.000000e-01 : f32
    %139 = vector.broadcast %cst_55 : f32 to vector<8x128xf32>
    %140 = arith.mulf %139, %138 : vector<8x128xf32>
    %cst_56 = arith.constant 5.000000e-01 : f32
    %141 = vector.broadcast %cst_56 : f32 to vector<8x128xf32>
    %142 = arith.addf %140, %141 : vector<8x128xf32>
    %143 = vector.extract_strided_slice %134 {offsets = [0, 128], sizes = [8, 128], strides = [1, 1]} : vector<8x512xf32> to vector<8x128xf32>
    %cst_57 = arith.constant 5.000000e-01 : f32
    %144 = vector.broadcast %cst_57 : f32 to vector<8x128xf32>
    %145 = arith.mulf %144, %143 : vector<8x128xf32>
    %146 = math.tanh %145 : vector<8x128xf32>
    %cst_58 = arith.constant 5.000000e-01 : f32
    %147 = vector.broadcast %cst_58 : f32 to vector<8x128xf32>
    %148 = arith.mulf %147, %146 : vector<8x128xf32>
    %cst_59 = arith.constant 5.000000e-01 : f32
    %149 = vector.broadcast %cst_59 : f32 to vector<8x128xf32>
    %150 = arith.addf %148, %149 : vector<8x128xf32>
    %151 = vector.extract_strided_slice %134 {offsets = [0, 256], sizes = [8, 128], strides = [1, 1]} : vector<8x512xf32> to vector<8x128xf32>
    %152 = math.tanh %151 : vector<8x128xf32>
    %153 = vector.extract_strided_slice %134 {offsets = [0, 384], sizes = [8, 128], strides = [1, 1]} : vector<8x512xf32> to vector<8x128xf32>
    %cst_60 = arith.constant 5.000000e-01 : f32
    %154 = vector.broadcast %cst_60 : f32 to vector<8x128xf32>
    %155 = arith.mulf %154, %153 : vector<8x128xf32>
    %156 = math.tanh %155 : vector<8x128xf32>
    %cst_61 = arith.constant 5.000000e-01 : f32
    %157 = vector.broadcast %cst_61 : f32 to vector<8x128xf32>
    %158 = arith.mulf %157, %156 : vector<8x128xf32>
    %cst_62 = arith.constant 5.000000e-01 : f32
    %159 = vector.broadcast %cst_62 : f32 to vector<8x128xf32>
    %160 = arith.addf %158, %159 : vector<8x128xf32>
    %161 = arith.mulf %150, %125 : vector<8x128xf32>
    %162 = arith.mulf %142, %152 : vector<8x128xf32>
    %163 = arith.addf %161, %162 : vector<8x128xf32>
    %164 = math.tanh %163 : vector<8x128xf32>
    %165 = arith.mulf %160, %164 : vector<8x128xf32>
    %c4_i32 = arith.constant 4 : i32
    %c8_i32_63 = arith.constant 8 : i32
    %166 = arith.muli %c4_i32, %c8_i32_63 : i32
    %167 = tpu.assume_multiple %166, 8 : i32
    %168 = arith.index_cast %167 : i32 to index
    %c0_64 = arith.constant 0 : index
    %169 = vector.load %arg15[%168, %c0_64] : memref<64x512xf32, #tpu.memory_space<vmem>>, vector<8x512xf32>
    %170 = arith.truncf %165 : vector<8x128xf32> to vector<8x128xbf16>
    %cst_65 = arith.constant dense<0.000000e+00> : vector<8x512xf32>
    %171 = tpu.matmul %170, %11, %cst_65 {dimension_numbers = #tpu.dot_dimension_numbers<[1], [0], [0], [1], [0, 0, 1, 1], [], []>} : vector<8x128xbf16>, vector<128x512xbf16>, vector<8x512xf32> -> vector<8x512xf32>
    %172 = arith.addf %169, %171 : vector<8x512xf32>
    %173 = vector.extract_strided_slice %172 {offsets = [0, 0], sizes = [8, 128], strides = [1, 1]} : vector<8x512xf32> to vector<8x128xf32>
    %cst_66 = arith.constant 5.000000e-01 : f32
    %174 = vector.broadcast %cst_66 : f32 to vector<8x128xf32>
    %175 = arith.mulf %174, %173 : vector<8x128xf32>
    %176 = math.tanh %175 : vector<8x128xf32>
    %cst_67 = arith.constant 5.000000e-01 : f32
    %177 = vector.broadcast %cst_67 : f32 to vector<8x128xf32>
    %178 = arith.mulf %177, %176 : vector<8x128xf32>
    %cst_68 = arith.constant 5.000000e-01 : f32
    %179 = vector.broadcast %cst_68 : f32 to vector<8x128xf32>
    %180 = arith.addf %178, %179 : vector<8x128xf32>
    %181 = vector.extract_strided_slice %172 {offsets = [0, 128], sizes = [8, 128], strides = [1, 1]} : vector<8x512xf32> to vector<8x128xf32>
    %cst_69 = arith.constant 5.000000e-01 : f32
    %182 = vector.broadcast %cst_69 : f32 to vector<8x128xf32>
    %183 = arith.mulf %182, %181 : vector<8x128xf32>
    %184 = math.tanh %183 : vector<8x128xf32>
    %cst_70 = arith.constant 5.000000e-01 : f32
    %185 = vector.broadcast %cst_70 : f32 to vector<8x128xf32>
    %186 = arith.mulf %185, %184 : vector<8x128xf32>
    %cst_71 = arith.constant 5.000000e-01 : f32
    %187 = vector.broadcast %cst_71 : f32 to vector<8x128xf32>
    %188 = arith.addf %186, %187 : vector<8x128xf32>
    %189 = vector.extract_strided_slice %172 {offsets = [0, 256], sizes = [8, 128], strides = [1, 1]} : vector<8x512xf32> to vector<8x128xf32>
    %190 = math.tanh %189 : vector<8x128xf32>
    %191 = vector.extract_strided_slice %172 {offsets = [0, 384], sizes = [8, 128], strides = [1, 1]} : vector<8x512xf32> to vector<8x128xf32>
    %cst_72 = arith.constant 5.000000e-01 : f32
    %192 = vector.broadcast %cst_72 : f32 to vector<8x128xf32>
    %193 = arith.mulf %192, %191 : vector<8x128xf32>
    %194 = math.tanh %193 : vector<8x128xf32>
    %cst_73 = arith.constant 5.000000e-01 : f32
    %195 = vector.broadcast %cst_73 : f32 to vector<8x128xf32>
    %196 = arith.mulf %195, %194 : vector<8x128xf32>
    %cst_74 = arith.constant 5.000000e-01 : f32
    %197 = vector.broadcast %cst_74 : f32 to vector<8x128xf32>
    %198 = arith.addf %196, %197 : vector<8x128xf32>
    %199 = arith.mulf %188, %163 : vector<8x128xf32>
    %200 = arith.mulf %180, %190 : vector<8x128xf32>
    %201 = arith.addf %199, %200 : vector<8x128xf32>
    %202 = math.tanh %201 : vector<8x128xf32>
    %203 = arith.mulf %198, %202 : vector<8x128xf32>
    %c5_i32 = arith.constant 5 : i32
    %c8_i32_75 = arith.constant 8 : i32
    %204 = arith.muli %c5_i32, %c8_i32_75 : i32
    %205 = tpu.assume_multiple %204, 8 : i32
    %206 = arith.index_cast %205 : i32 to index
    %c0_76 = arith.constant 0 : index
    %207 = vector.load %arg15[%206, %c0_76] : memref<64x512xf32, #tpu.memory_space<vmem>>, vector<8x512xf32>
    %208 = arith.truncf %203 : vector<8x128xf32> to vector<8x128xbf16>
    %cst_77 = arith.constant dense<0.000000e+00> : vector<8x512xf32>
    %209 = tpu.matmul %208, %11, %cst_77 {dimension_numbers = #tpu.dot_dimension_numbers<[1], [0], [0], [1], [0, 0, 1, 1], [], []>} : vector<8x128xbf16>, vector<128x512xbf16>, vector<8x512xf32> -> vector<8x512xf32>
    %210 = arith.addf %207, %209 : vector<8x512xf32>
    %211 = vector.extract_strided_slice %210 {offsets = [0, 0], sizes = [8, 128], strides = [1, 1]} : vector<8x512xf32> to vector<8x128xf32>
    %cst_78 = arith.constant 5.000000e-01 : f32
    %212 = vector.broadcast %cst_78 : f32 to vector<8x128xf32>
    %213 = arith.mulf %212, %211 : vector<8x128xf32>
    %214 = math.tanh %213 : vector<8x128xf32>
    %cst_79 = arith.constant 5.000000e-01 : f32
    %215 = vector.broadcast %cst_79 : f32 to vector<8x128xf32>
    %216 = arith.mulf %215, %214 : vector<8x128xf32>
    %cst_80 = arith.constant 5.000000e-01 : f32
    %217 = vector.broadcast %cst_80 : f32 to vector<8x128xf32>
    %218 = arith.addf %216, %217 : vector<8x128xf32>
    %219 = vector.extract_strided_slice %210 {offsets = [0, 128], sizes = [8, 128], strides = [1, 1]} : vector<8x512xf32> to vector<8x128xf32>
    %cst_81 = arith.constant 5.000000e-01 : f32
    %220 = vector.broadcast %cst_81 : f32 to vector<8x128xf32>
    %221 = arith.mulf %220, %219 : vector<8x128xf32>
    %222 = math.tanh %221 : vector<8x128xf32>
    %cst_82 = arith.constant 5.000000e-01 : f32
    %223 = vector.broadcast %cst_82 : f32 to vector<8x128xf32>
    %224 = arith.mulf %223, %222 : vector<8x128xf32>
    %cst_83 = arith.constant 5.000000e-01 : f32
    %225 = vector.broadcast %cst_83 : f32 to vector<8x128xf32>
    %226 = arith.addf %224, %225 : vector<8x128xf32>
    %227 = vector.extract_strided_slice %210 {offsets = [0, 256], sizes = [8, 128], strides = [1, 1]} : vector<8x512xf32> to vector<8x128xf32>
    %228 = math.tanh %227 : vector<8x128xf32>
    %229 = vector.extract_strided_slice %210 {offsets = [0, 384], sizes = [8, 128], strides = [1, 1]} : vector<8x512xf32> to vector<8x128xf32>
    %cst_84 = arith.constant 5.000000e-01 : f32
    %230 = vector.broadcast %cst_84 : f32 to vector<8x128xf32>
    %231 = arith.mulf %230, %229 : vector<8x128xf32>
    %232 = math.tanh %231 : vector<8x128xf32>
    %cst_85 = arith.constant 5.000000e-01 : f32
    %233 = vector.broadcast %cst_85 : f32 to vector<8x128xf32>
    %234 = arith.mulf %233, %232 : vector<8x128xf32>
    %cst_86 = arith.constant 5.000000e-01 : f32
    %235 = vector.broadcast %cst_86 : f32 to vector<8x128xf32>
    %236 = arith.addf %234, %235 : vector<8x128xf32>
    %237 = arith.mulf %226, %201 : vector<8x128xf32>
    %238 = arith.mulf %218, %228 : vector<8x128xf32>
    %239 = arith.addf %237, %238 : vector<8x128xf32>
    %240 = math.tanh %239 : vector<8x128xf32>
    %241 = arith.mulf %236, %240 : vector<8x128xf32>
    %c6_i32 = arith.constant 6 : i32
    %c8_i32_87 = arith.constant 8 : i32
    %242 = arith.muli %c6_i32, %c8_i32_87 : i32
    %243 = tpu.assume_multiple %242, 8 : i32
    %244 = arith.index_cast %243 : i32 to index
    %c0_88 = arith.constant 0 : index
    %245 = vector.load %arg15[%244, %c0_88] : memref<64x512xf32, #tpu.memory_space<vmem>>, vector<8x512xf32>
    %246 = arith.truncf %241 : vector<8x128xf32> to vector<8x128xbf16>
    %cst_89 = arith.constant dense<0.000000e+00> : vector<8x512xf32>
    %247 = tpu.matmul %246, %11, %cst_89 {dimension_numbers = #tpu.dot_dimension_numbers<[1], [0], [0], [1], [0, 0, 1, 1], [], []>} : vector<8x128xbf16>, vector<128x512xbf16>, vector<8x512xf32> -> vector<8x512xf32>
    %248 = arith.addf %245, %247 : vector<8x512xf32>
    %249 = vector.extract_strided_slice %248 {offsets = [0, 0], sizes = [8, 128], strides = [1, 1]} : vector<8x512xf32> to vector<8x128xf32>
    %cst_90 = arith.constant 5.000000e-01 : f32
    %250 = vector.broadcast %cst_90 : f32 to vector<8x128xf32>
    %251 = arith.mulf %250, %249 : vector<8x128xf32>
    %252 = math.tanh %251 : vector<8x128xf32>
    %cst_91 = arith.constant 5.000000e-01 : f32
    %253 = vector.broadcast %cst_91 : f32 to vector<8x128xf32>
    %254 = arith.mulf %253, %252 : vector<8x128xf32>
    %cst_92 = arith.constant 5.000000e-01 : f32
    %255 = vector.broadcast %cst_92 : f32 to vector<8x128xf32>
    %256 = arith.addf %254, %255 : vector<8x128xf32>
    %257 = vector.extract_strided_slice %248 {offsets = [0, 128], sizes = [8, 128], strides = [1, 1]} : vector<8x512xf32> to vector<8x128xf32>
    %cst_93 = arith.constant 5.000000e-01 : f32
    %258 = vector.broadcast %cst_93 : f32 to vector<8x128xf32>
    %259 = arith.mulf %258, %257 : vector<8x128xf32>
    %260 = math.tanh %259 : vector<8x128xf32>
    %cst_94 = arith.constant 5.000000e-01 : f32
    %261 = vector.broadcast %cst_94 : f32 to vector<8x128xf32>
    %262 = arith.mulf %261, %260 : vector<8x128xf32>
    %cst_95 = arith.constant 5.000000e-01 : f32
    %263 = vector.broadcast %cst_95 : f32 to vector<8x128xf32>
    %264 = arith.addf %262, %263 : vector<8x128xf32>
    %265 = vector.extract_strided_slice %248 {offsets = [0, 256], sizes = [8, 128], strides = [1, 1]} : vector<8x512xf32> to vector<8x128xf32>
    %266 = math.tanh %265 : vector<8x128xf32>
    %267 = vector.extract_strided_slice %248 {offsets = [0, 384], sizes = [8, 128], strides = [1, 1]} : vector<8x512xf32> to vector<8x128xf32>
    %cst_96 = arith.constant 5.000000e-01 : f32
    %268 = vector.broadcast %cst_96 : f32 to vector<8x128xf32>
    %269 = arith.mulf %268, %267 : vector<8x128xf32>
    %270 = math.tanh %269 : vector<8x128xf32>
    %cst_97 = arith.constant 5.000000e-01 : f32
    %271 = vector.broadcast %cst_97 : f32 to vector<8x128xf32>
    %272 = arith.mulf %271, %270 : vector<8x128xf32>
    %cst_98 = arith.constant 5.000000e-01 : f32
    %273 = vector.broadcast %cst_98 : f32 to vector<8x128xf32>
    %274 = arith.addf %272, %273 : vector<8x128xf32>
    %275 = arith.mulf %264, %239 : vector<8x128xf32>
    %276 = arith.mulf %256, %266 : vector<8x128xf32>
    %277 = arith.addf %275, %276 : vector<8x128xf32>
    %278 = math.tanh %277 : vector<8x128xf32>
    %279 = arith.mulf %274, %278 : vector<8x128xf32>
    %c7_i32 = arith.constant 7 : i32
    %c8_i32_99 = arith.constant 8 : i32
    %280 = arith.muli %c7_i32, %c8_i32_99 : i32
    %281 = tpu.assume_multiple %280, 8 : i32
    %282 = arith.index_cast %281 : i32 to index
    %c0_100 = arith.constant 0 : index
    %283 = vector.load %arg15[%282, %c0_100] : memref<64x512xf32, #tpu.memory_space<vmem>>, vector<8x512xf32>
    %284 = arith.truncf %279 : vector<8x128xf32> to vector<8x128xbf16>
    %cst_101 = arith.constant dense<0.000000e+00> : vector<8x512xf32>
    %285 = tpu.matmul %284, %11, %cst_101 {dimension_numbers = #tpu.dot_dimension_numbers<[1], [0], [0], [1], [0, 0, 1, 1], [], []>} : vector<8x128xbf16>, vector<128x512xbf16>, vector<8x512xf32> -> vector<8x512xf32>
    %286 = arith.addf %283, %285 : vector<8x512xf32>
    %287 = vector.extract_strided_slice %286 {offsets = [0, 0], sizes = [8, 128], strides = [1, 1]} : vector<8x512xf32> to vector<8x128xf32>
    %cst_102 = arith.constant 5.000000e-01 : f32
    %288 = vector.broadcast %cst_102 : f32 to vector<8x128xf32>
    %289 = arith.mulf %288, %287 : vector<8x128xf32>
    %290 = math.tanh %289 : vector<8x128xf32>
    %cst_103 = arith.constant 5.000000e-01 : f32
    %291 = vector.broadcast %cst_103 : f32 to vector<8x128xf32>
    %292 = arith.mulf %291, %290 : vector<8x128xf32>
    %cst_104 = arith.constant 5.000000e-01 : f32
    %293 = vector.broadcast %cst_104 : f32 to vector<8x128xf32>
    %294 = arith.addf %292, %293 : vector<8x128xf32>
    %295 = vector.extract_strided_slice %286 {offsets = [0, 128], sizes = [8, 128], strides = [1, 1]} : vector<8x512xf32> to vector<8x128xf32>
    %cst_105 = arith.constant 5.000000e-01 : f32
    %296 = vector.broadcast %cst_105 : f32 to vector<8x128xf32>
    %297 = arith.mulf %296, %295 : vector<8x128xf32>
    %298 = math.tanh %297 : vector<8x128xf32>
    %cst_106 = arith.constant 5.000000e-01 : f32
    %299 = vector.broadcast %cst_106 : f32 to vector<8x128xf32>
    %300 = arith.mulf %299, %298 : vector<8x128xf32>
    %cst_107 = arith.constant 5.000000e-01 : f32
    %301 = vector.broadcast %cst_107 : f32 to vector<8x128xf32>
    %302 = arith.addf %300, %301 : vector<8x128xf32>
    %303 = vector.extract_strided_slice %286 {offsets = [0, 256], sizes = [8, 128], strides = [1, 1]} : vector<8x512xf32> to vector<8x128xf32>
    %304 = math.tanh %303 : vector<8x128xf32>
    %305 = vector.extract_strided_slice %286 {offsets = [0, 384], sizes = [8, 128], strides = [1, 1]} : vector<8x512xf32> to vector<8x128xf32>
    %cst_108 = arith.constant 5.000000e-01 : f32
    %306 = vector.broadcast %cst_108 : f32 to vector<8x128xf32>
    %307 = arith.mulf %306, %305 : vector<8x128xf32>
    %308 = math.tanh %307 : vector<8x128xf32>
    %cst_109 = arith.constant 5.000000e-01 : f32
    %309 = vector.broadcast %cst_109 : f32 to vector<8x128xf32>
    %310 = arith.mulf %309, %308 : vector<8x128xf32>
    %cst_110 = arith.constant 5.000000e-01 : f32
    %311 = vector.broadcast %cst_110 : f32 to vector<8x128xf32>
    %312 = arith.addf %310, %311 : vector<8x128xf32>
    %313 = arith.mulf %302, %277 : vector<8x128xf32>
    %314 = arith.mulf %294, %304 : vector<8x128xf32>
    %315 = arith.addf %313, %314 : vector<8x128xf32>
    %316 = math.tanh %315 : vector<8x128xf32>
    %317 = arith.mulf %312, %316 : vector<8x128xf32>
    %c8_i32_111 = arith.constant 8 : i32
    %c0_112 = arith.constant 0 : index
    %c0_113 = arith.constant 0 : index
    %318 = vector.load %arg13[%c0_112, %c0_113] : memref<8x128xf32, #tpu.memory_space<vmem>>, vector<8x128xf32>
    tpu.vector_store %arg13[%c0_112, %c0_113], %317 {strides = array<i32>} : memref<8x128xf32, #tpu.memory_space<vmem>>, vector<8x128xf32>,
    %c0_114 = arith.constant 0 : index
    %c0_115 = arith.constant 0 : index
    %319 = vector.load %arg14[%c0_114, %c0_115] : memref<8x128xf32, #tpu.memory_space<vmem>>, vector<8x128xf32>
    tpu.vector_store %arg14[%c0_114, %c0_115], %315 {strides = array<i32>} : memref<8x128xf32, #tpu.memory_space<vmem>>, vector<8x128xf32>,
    %c0_i32_116 = arith.constant 0 : i32
    %320 = arith.cmpi eq, %arg1, %c0_i32_116 : i32
    %321 = arith.extui %320 : i1 to i32
    %c0_i32_117 = arith.constant 0 : i32
    %322 = arith.cmpi ne, %321, %c0_i32_117 : i32
    scf.if %322 {
      %c0_118 = arith.constant 0 : index
      %c0_119 = arith.constant 0 : index
      %323 = vector.load %arg11[%c0_118, %c0_119] : memref<8x128xf32, #tpu.memory_space<vmem>>, vector<8x128xf32>
      tpu.vector_store %arg11[%c0_118, %c0_119], %317 {strides = array<i32>} : memref<8x128xf32, #tpu.memory_space<vmem>>, vector<8x128xf32>,
      %c0_120 = arith.constant 0 : index
      %c0_121 = arith.constant 0 : index
      %324 = vector.load %arg12[%c0_120, %c0_121] : memref<8x128xf32, #tpu.memory_space<vmem>>, vector<8x128xf32>
      tpu.vector_store %arg12[%c0_120, %c0_121], %315 {strides = array<i32>} : memref<8x128xf32, #tpu.memory_space<vmem>>, vector<8x128xf32>,
      %c0_122 = arith.constant 0 : index
      %c0_123 = arith.constant 0 : index
      %325 = vector.load %arg8[%c0_122, %c0_123] : memref<128x128xbf16, #tpu.memory_space<vmem>>, vector<128x128xbf16>
      %326 = arith.truncf %317 : vector<8x128xf32> to vector<8x128xbf16>
      %cst_124 = arith.constant dense<0.000000e+00> : vector<8x128xf32>
      %327 = tpu.matmul %326, %325, %cst_124 {dimension_numbers = #tpu.dot_dimension_numbers<[1], [0], [0], [1], [0, 0, 1, 1], [], []>} : vector<8x128xbf16>, vector<128x128xbf16>, vector<8x128xf32> -> vector<8x128xf32>
      %c0_125 = arith.constant 0 : index
      %c0_126 = arith.constant 0 : index
      %328 = vector.load %arg9[%c0_125, %c0_126] : memref<1x128xf32, #tpu.memory_space<vmem>>, vector<1x128xf32>
      %329 = vector.broadcast %328 : vector<1x128xf32> to vector<8x128xf32>
      %330 = arith.addf %327, %329 : vector<8x128xf32>
      %c0_127 = arith.constant 0 : index
      %c0_128 = arith.constant 0 : index
      %331 = vector.load %arg10[%c0_127, %c0_128] : memref<8x128xf32, #tpu.memory_space<vmem>>, vector<8x128xf32>
      tpu.vector_store %arg10[%c0_127, %c0_128], %330 {strides = array<i32>} : memref<8x128xf32, #tpu.memory_space<vmem>>, vector<8x128xf32>,
    } else {
    }
    return
  }
  func.func @transform_0(%arg0: i32, %arg1: i32) -> (i32, i32, i32) {
    %c0_i32 = arith.constant 0 : i32
    %c0_i32_0 = arith.constant 0 : i32
    return %arg1, %arg0, %c0_i32 : i32, i32, i32
  }
  func.func @transform_1(%arg0: i32, %arg1: i32) -> (i32, i32) {
    %c0_i32 = arith.constant 0 : i32
    %c0_i32_0 = arith.constant 0 : i32
    return %arg0, %c0_i32 : i32, i32
  }
  func.func @transform_2(%arg0: i32, %arg1: i32) -> (i32, i32) {
    %c0_i32 = arith.constant 0 : i32
    %c0_i32_0 = arith.constant 0 : i32
    return %arg0, %c0_i32 : i32, i32
  }
  func.func @transform_3(%arg0: i32, %arg1: i32) -> (i32, i32) {
    %c0_i32 = arith.constant 0 : i32
    %c0_i32_0 = arith.constant 0 : i32
    %c0_i32_1 = arith.constant 0 : i32
    return %c0_i32, %c0_i32_0 : i32, i32
  }
  func.func @transform_4(%arg0: i32, %arg1: i32) -> (i32, i32) {
    %c0_i32 = arith.constant 0 : i32
    %c0_i32_0 = arith.constant 0 : i32
    %c0_i32_1 = arith.constant 0 : i32
    return %c0_i32, %c0_i32_0 : i32, i32
  }
  func.func @transform_5(%arg0: i32, %arg1: i32) -> (i32, i32) {
    %c0_i32 = arith.constant 0 : i32
    %c0_i32_0 = arith.constant 0 : i32
    %c0_i32_1 = arith.constant 0 : i32
    return %c0_i32, %c0_i32_0 : i32, i32
  }
  func.func @transform_6(%arg0: i32, %arg1: i32) -> (i32, i32) {
    %c0_i32 = arith.constant 0 : i32
    %c0_i32_0 = arith.constant 0 : i32
    %c0_i32_1 = arith.constant 0 : i32
    return %c0_i32, %c0_i32_0 : i32, i32
  }
  func.func @transform_7(%arg0: i32, %arg1: i32) -> (i32, i32) {
    %c0_i32 = arith.constant 0 : i32
    %c0_i32_0 = arith.constant 0 : i32
    %c0_i32_1 = arith.constant 0 : i32
    return %c0_i32, %c0_i32_0 : i32, i32
  }
  func.func @transform_8(%arg0: i32, %arg1: i32) -> (i32, i32) {
    %c0_i32 = arith.constant 0 : i32
    %c0_i32_0 = arith.constant 0 : i32
    return %arg0, %c0_i32 : i32, i32
  }
  func.func @transform_9(%arg0: i32, %arg1: i32) -> (i32, i32) {
    %c0_i32 = arith.constant 0 : i32
    %c0_i32_0 = arith.constant 0 : i32
    return %arg0, %c0_i32 : i32, i32
  }
  func.func @transform_10(%arg0: i32, %arg1: i32) -> (i32, i32) {
    %c0_i32 = arith.constant 0 : i32
    %c0_i32_0 = arith.constant 0 : i32
    return %arg0, %c0_i32 : i32, i32
  }
}

</mosaic_0001>

<bundles_post_ra>
// kernel: tpu_custom_call.1
= control target key start
LH: loop header
LB: loop body
LE: loop exit
PB: predicated region body
PF: predicated region fallthrough
CT: control target
= control target key end

     0   :  { %16 = vsyncpa [#allocation6], 0  ;;  %s3079_s0 = inlined_call_operand.hbm [shape: bf16[8,8,128], index: 0, kind: input, shape index: {}]   ;;  %s3080_s1 = inlined_call_operand.hbm [shape: f32[8,128], index: 1, kind: input, shape index: {}]   ;;  %s3081_s2 = inlined_call_operand.hbm [shape: f32[8,128], index: 2, kind: input, shape index: {}]   ;;  %s3082_s3 = inlined_call_operand.hbm [shape: bf16[128,512], index: 3, kind: input, shape index: {}]   ;;  %s3083_s4 = inlined_call_operand.hbm [shape: bf16[128,512], index: 4, kind: input, shape index: {}]   ;;  %s3084_s5 = inlined_call_operand.vmem [shape: f32[1,512], index: 5, kind: input, shape index: {}]   ;;  %s3085_s6 = inlined_call_operand.hbm [shape: bf16[128,128], index: 6, kind: input, shape index: {}]   ;;  %s3086_s7 = inlined_call_operand.vmem [shape: f32[1,128], index: 7, kind: input, shape index: {}]   ;;  %s3087_s8 = inlined_call_operand.hbm [shape: f32[8,128], index: 8, kind: output, shape index: {0}]   ;;  %s3088_s9 = inlined_call_operand.hbm [shape: f32[8,128], index: 9, kind: output, shape index: {1}]   ;;  %s3089_s10 = inlined_call_operand.hbm [shape: f32[8,128], index: 10, kind: output, shape index: {2}]  }
   0x1   :  { %17 = vsyncpa [#allocation9], 0 }
   0x2   :  { %18 = vsyncpa [#allocation12], 0 }
   0x3   :  { %19 = vsyncpa [#allocation15], 0 }
   0x4   :  { %20 = vsyncpa [#allocation7], 0 }
   0x5   :  { %21 = vsyncpa [#allocation18], 0  ;;  %s2359_s13 = smov [#allocation8]   ;;  %s2360_s15 = smov [#allocation11]  }
   0x6   :  { %s40_s14 = sshll.u32 %s2359_s13, 4  ;;  %s59_s16 = sshll.u32 %s2360_s15, 4  ;;  %s41_s14 = int_to_ptr.vmem [resolvable:$true] %s40_s14  ;;  %s2430_s16 = int_to_ptr.vmem [resolvable:$true] %s59_s16 }
   0x7   :  { %s2149_s19 = scalar_lea.hbm %s3080_s1, 128 }
   0x8   :  { %p2150_p0 = scmp.ne.s32.totalorder %s3080_s1, %s2149_s19  ;;  %p2153_p1 = scmp.lt.u32.totalorder %s2149_s19, %s3080_s1 }
   0xa   :  { %p2155_p2 = pnand %p2153_p1, %p2150_p0 }
   0xc   :  { %2158 = shalt.err (!%p2155_p2)
}
   0xd   :  { %s2159_s24 = scalar_lea.vmem %s41_s14, 128  ;;  %p2164_p4 = scmp.lt.s32.totalorder %s41_s14, %s41_s14 }
   0xe   :  { %p2160_p3 = scmp.ne.s32.totalorder %s41_s14, %s2159_s24  ;;  %p2165_p5 = scmp.lt.s32.totalorder %s2159_s24, %s2159_s24 }
  0x10   :  { %p2166_p6 = por %p2165_p5, %p2164_p4 }
  0x12   :  { %p2167_p7 = pnand %p2166_p6, %p2160_p3 }
  0x14   :  { %2170 = shalt.err (!%p2167_p7)
}
  0x15   :  { %43 = dma.hbm_to_vmem [thread:$0]  %s3080_s1, 128, %s41_s14, [#allocation9]  }
  0x16   :  { %s2171_s29 = scalar_lea.hbm %s3082_s3, 4096 }
  0x17   :  { %p2172_p8 = scmp.ne.s32.totalorder %s3082_s3, %s2171_s29  ;;  %p2175_p9 = scmp.lt.u32.totalorder %s2171_s29, %s3082_s3 }
  0x19   :  { %p2177_p10 = pnand %p2175_p9, %p2172_p8 }
  0x1b   :  { %2180 = shalt.err (!%p2177_p10)
}
  0x1c   :  { %s2181_s15 = scalar_lea.vmem %s2430_s16, 4096  ;;  %p2186_p12 = scmp.lt.s32.totalorder %s2430_s16, %s2430_s16 }
  0x1d   :  { %p2182_p11 = scmp.ne.s32.totalorder %s2430_s16, %s2181_s15  ;;  %p2187_p13 = scmp.lt.s32.totalorder %s2181_s15, %s2181_s15 }
  0x1f   :  { %p2188_p0 = por %p2187_p13, %p2186_p12 }
  0x21   :  { %p2189_p1 = pnand %p2188_p0, %p2182_p11 }
  0x23   :  { %2192 = shalt.err (!%p2189_p1)
}
  0x24   :  { %s2361_s1 = smov 256   ;;  %s2362_s14 = smov 16  }
  0x25   :  { %65 = dma.hbm_to_vmem [thread:$0]  %s3082_s3, 4096, %s2430_s16, [#allocation12], %s2361_s1, %s2361_s1, %s2362_s14  }
  0x26   :  { %s2363_s19 = smov [#allocation5]   ;;  %s2193_s23 = scalar_lea.hbm %s3079_s0, 512 }
  0x27   :  { %s27_s20 = sshll.u32 %s2363_s19, 4  ;;  %p2194_p2 = scmp.ne.s32.totalorder %s3079_s0, %s2193_s23  ;;  %s28_s20 = int_to_ptr.vmem [resolvable:$true] %s27_s20 }
  0x28   :  { %p2197_p3 = scmp.lt.u32.totalorder %s2193_s23, %s3079_s0 }
  0x2a   :  { %p2199_p4 = pnand %p2197_p3, %p2194_p2 }
  0x2c   :  { %2202 = shalt.err (!%p2199_p4)
}
  0x2d   :  { %s2203_s28 = scalar_lea.vmem %s28_s20, 512  ;;  %p2208_p6 = scmp.lt.s32.totalorder %s28_s20, %s28_s20 }
  0x2e   :  { %p2204_p5 = scmp.ne.s32.totalorder %s28_s20, %s2203_s28  ;;  %p2209_p7 = scmp.lt.s32.totalorder %s2203_s28, %s2203_s28 }
  0x30   :  { %p2210_p8 = por %p2209_p7, %p2208_p6 }
  0x32   :  { %p2211_p9 = pnand %p2210_p8, %p2204_p5 }
  0x34   :  { %2214 = shalt.err (!%p2211_p9)
}
  0x35   :  { %s2364_s3 = smov 64   ;;  %s2365_s16 = smov 4  }
  0x36   :  { %33 = dma.hbm_to_vmem [thread:$0]  %s3079_s0, 512, %s28_s20, [#allocation6], %s2364_s3, %s2364_s3, %s2365_s16  }
  0x37   :  { %s2366_s11 = smov [#allocation10]   ;;  %s2367_s13 = smov [#allocation13]  }
  0x38   :  { %s50_s12 = sshll.u32 %s2366_s11, 4  ;;  %s71_s15 = sshll.u32 %s2367_s13, 4  ;;  %s51_s12 = int_to_ptr.vmem [resolvable:$true] %s50_s12  ;;  %s72_s15 = int_to_ptr.vmem [resolvable:$true] %s71_s15 }
  0x39   :  { %s2215_s19 = scalar_lea.hbm %s3081_s2, 128 }
  0x3a   :  { %p2216_p10 = scmp.ne.s32.totalorder %s3081_s2, %s2215_s19  ;;  %p2219_p11 = scmp.lt.u32.totalorder %s2215_s19, %s3081_s2 }
  0x3c   :  { %p2221_p12 = pnand %p2219_p11, %p2216_p10 }
  0x3e   :  { %2224 = shalt.err (!%p2221_p12)
}
  0x3f   :  { %s2225_s0 = scalar_lea.vmem %s51_s12, 128  ;;  %p2230_p0 = scmp.lt.s32.totalorder %s51_s12, %s51_s12 }
  0x40   :  { %p2226_p13 = scmp.ne.s32.totalorder %s51_s12, %s2225_s0  ;;  %p2231_p1 = scmp.lt.s32.totalorder %s2225_s0, %s2225_s0 }
  0x42   :  { %p2232_p2 = por %p2231_p1, %p2230_p0 }
  0x44   :  { %p2233_p3 = pnand %p2232_p2, %p2226_p13 }
  0x46   :  { %2236 = shalt.err (!%p2233_p3)
}
  0x47   :  { %53 = dma.hbm_to_vmem [thread:$0]  %s3081_s2, 128, %s51_s12, [#allocation9]  }
  0x48   :  { %s2237_s28 = scalar_lea.hbm %s3083_s4, 4096 }
  0x49   :  { %p2238_p4 = scmp.ne.s32.totalorder %s3083_s4, %s2237_s28  ;;  %p2241_p5 = scmp.lt.u32.totalorder %s2237_s28, %s3083_s4 }
  0x4b   :  { %p2243_p6 = pnand %p2241_p5, %p2238_p4 }
  0x4d   :  { %2246 = shalt.err (!%p2243_p6)
}
  0x4e   :  { %s2247_s17 = scalar_lea.vmem %s72_s15, 4096  ;;  %p2252_p8 = scmp.lt.s32.totalorder %s72_s15, %s72_s15 }
  0x4f   :  { %p2248_p7 = scmp.ne.s32.totalorder %s72_s15, %s2247_s17  ;;  %p2253_p9 = scmp.lt.s32.totalorder %s2247_s17, %s2247_s17 }
  0x51   :  { %p2254_p10 = por %p2253_p9, %p2252_p8 }
  0x53   :  { %p2255_p11 = pnand %p2254_p10, %p2248_p7 }
  0x55   :  { %2258 = shalt.err (!%p2255_p11)
}
  0x56   :  { %77 = dma.hbm_to_vmem [thread:$0]  %s3083_s4, 4096, %s72_s15, [#allocation12], %s2361_s1, %s2361_s1, %s2362_s14  }
  0x57   :  { %s2368_s18 = smov [#allocation14]   ;;  %s2259_s23 = scalar_lea.hbm %s3085_s6, 1024 }
  0x58   :  { %s85_s19 = sshll.u32 %s2368_s18, 4  ;;  %p2260_p12 = scmp.ne.s32.totalorder %s3085_s6, %s2259_s23  ;;  %s86_s19 = int_to_ptr.vmem [resolvable:$true] %s85_s19 }
  0x59   :  { %p2263_p13 = scmp.lt.u32.totalorder %s2259_s23, %s3085_s6 }
  0x5b   :  { %p2265_p0 = pnand %p2263_p13, %p2260_p12 }
  0x5d   :  { %2268 = shalt.err (!%p2265_p0)
}
  0x5e   :  { %s2269_s26 = scalar_lea.vmem %s86_s19, 1024  ;;  %p2274_p2 = scmp.lt.s32.totalorder %s86_s19, %s86_s19 }
  0x5f   :  { %p2270_p1 = scmp.ne.s32.totalorder %s86_s19, %s2269_s26  ;;  %p2275_p3 = scmp.lt.s32.totalorder %s2269_s26, %s2269_s26 }
  0x61   :  { %p2276_p4 = por %p2275_p3, %p2274_p2 }
  0x63   :  { %p2277_p5 = pnand %p2276_p4, %p2270_p1 }
  0x65   :  { %2280 = shalt.err (!%p2277_p5)
}
  0x66   :  { %91 = dma.hbm_to_vmem [thread:$0]  %s3085_s6, 1024, %s86_s19, [#allocation15], %s2364_s3, %s2364_s3, %s2365_s16  }
  0x67   :  { %2347 = dma.done.wait [#allocation6], 512  }
  0x68   :  { %2348 = vsyncadd [#allocation6], 4294966784 }
  0x69   :  { %2349 = dma.done.wait [#allocation9], 256  }
  0x6a   :  { %2350 = vsyncadd [#allocation9], 4294967040 }
  0x6b   :  { %2351 = dma.done.wait [#allocation12], 8192  }
  0x6c   :  { %2352 = vsyncadd [#allocation12], 4294959104 }
  0x6d   :  { %2353 = dma.done.wait [#allocation15], 1024  }
  0x6e   :  { %2354 = vsyncadd [#allocation15], 4294966272  ;;  %v3090_v0 = vmov 0   ;;  %v1929_v1 = vld [vmem:[#allocation11 + $0x4] ss:$16 sps:$4 sm:$0xff]   ;;  %v1990_v44 = vld [vmem:[#allocation5 + $0x8] sm:$0xff]  }
  0x6f   :  { %399 = vmatprep.mubr.bf16.mxu0 %v3090_v0  ;;  %472 = vmatprep.mubr.bf16.mxu1 %v3090_v0  ;;  %v1931_v2 = vld [vmem:[#allocation11 + $0xc] ss:$16 sps:$4 sm:$0xff]   ;;  %v1933_v3 = vld [vmem:[#allocation11] ss:$16 sps:$4 sm:$0xff]   ;;  %v1934_v4 = vld [vmem:[#allocation11 + $0x8] ss:$16 sps:$4 sm:$0xff]  }
  0x70   :  { %367 = vmatprep.subr.bf16.mxu0 %v1929_v1  ;;  %440 = vmatprep.subr.bf16.mxu1 %v1931_v2  ;;  %v1935_v5 = vld [vmem:[#allocation11 + $0x24] ss:$16 sps:$4 sm:$0xff]   ;;  %v1937_v6 = vld [vmem:[#allocation11 + $0x2c] ss:$16 sps:$4 sm:$0xff]   ;;  %v1939_v7 = vld [vmem:[#allocation11 + $0x20] ss:$16 sps:$4 sm:$0xff]  }
  0x71   :  { %368 = vmatpush1.bf16.msra.mxu0 %v1933_v3  ;;  %441 = vmatpush1.bf16.msra.mxu1 %v1934_v4  ;;  %v1940_v8 = vld [vmem:[#allocation11 + $0x28] ss:$16 sps:$4 sm:$0xff]   ;;  %v1941_v9 = vld [vmem:[#allocation11 + $0x44] ss:$16 sps:$4 sm:$0xff]   ;;  %v1943_v10 = vld [vmem:[#allocation11 + $0x4c] ss:$16 sps:$4 sm:$0xff]  }
  0x72   :  { %369 = vmatprep.subr.bf16.mxu0 %v1935_v5  ;;  %442 = vmatprep.subr.bf16.mxu1 %v1937_v6  ;;  %v1945_v11 = vld [vmem:[#allocation11 + $0x40] ss:$16 sps:$4 sm:$0xff]   ;;  %v1946_v12 = vld [vmem:[#allocation11 + $0x48] ss:$16 sps:$4 sm:$0xff]   ;;  %v1947_v13 = vld [vmem:[#allocation11 + $0x64] ss:$16 sps:$4 sm:$0xff]  }
  0x73   :  { %v1949_v14 = vld [vmem:[#allocation11 + $0x6c] ss:$16 sps:$4 sm:$0xff]   ;;  %v1951_v15 = vld [vmem:[#allocation11 + $0x60] ss:$16 sps:$4 sm:$0xff]   ;;  %v1952_v16 = vld [vmem:[#allocation11 + $0x68] ss:$16 sps:$4 sm:$0xff]  }
  0x74   :  { %v1953_v17 = vld [vmem:[#allocation11 + $0x84] ss:$16 sps:$4 sm:$0xff]   ;;  %v1955_v18 = vld [vmem:[#allocation11 + $0x8c] ss:$16 sps:$4 sm:$0xff]   ;;  %v1957_v19 = vld [vmem:[#allocation11 + $0x80] ss:$16 sps:$4 sm:$0xff]  }
  0x75   :  { %370 = vmatpush1.bf16.msra.mxu0 %v1939_v7  ;;  %443 = vmatpush1.bf16.msra.mxu1 %v1940_v8  ;;  %v1958_v20 = vld [vmem:[#allocation11 + $0x88] ss:$16 sps:$4 sm:$0xff]   ;;  %v1959_v21 = vld [vmem:[#allocation11 + $0xa4] ss:$16 sps:$4 sm:$0xff]   ;;  %v1961_v22 = vld [vmem:[#allocation11 + $0xac] ss:$16 sps:$4 sm:$0xff]   ;;  %v163_v8 = vlaneseq }
  0x76   :  { %371 = vmatprep.subr.bf16.mxu0 %v1941_v9  ;;  %444 = vmatprep.subr.bf16.mxu1 %v1943_v10  ;;  %v1963_v23 = vld [vmem:[#allocation11 + $0xa0] ss:$16 sps:$4 sm:$0xff]   ;;  %v1964_v24 = vld [vmem:[#allocation11 + $0xa8] ss:$16 sps:$4 sm:$0xff]   ;;  %v1965_v25 = vld [vmem:[#allocation11 + $0xc4] ss:$16 sps:$4 sm:$0xff]  }
  0x77   :  { %v1967_v26 = vld [vmem:[#allocation11 + $0xcc] ss:$16 sps:$4 sm:$0xff]   ;;  %v1969_v27 = vld [vmem:[#allocation11 + $0xc0] ss:$16 sps:$4 sm:$0xff]   ;;  %v1970_v28 = vld [vmem:[#allocation11 + $0xc8] ss:$16 sps:$4 sm:$0xff]  }
  0x78   :  { %v1971_v29 = vld [vmem:[#allocation11 + $0xe4] ss:$16 sps:$4 sm:$0xff]   ;;  %v1973_v30 = vld [vmem:[#allocation11 + $0xec] ss:$16 sps:$4 sm:$0xff]   ;;  %v1975_v31 = vld [vmem:[#allocation11 + $0xe0] ss:$16 sps:$4 sm:$0xff]  }
  0x79   :  { %372 = vmatpush1.bf16.msra.mxu0 %v1945_v11  ;;  %445 = vmatpush1.bf16.msra.mxu1 %v1946_v12  ;;  %v1976_v32 = vld [vmem:[#allocation11 + $0xe8] ss:$16 sps:$4 sm:$0xff]   ;;  %v2523_v33 = vld [vmem:[#allocation13 + $0x4] ss:$16 sps:$4 sm:$0xff]   ;;  %v2525_v34 = vld [vmem:[#allocation13 + $0xc] ss:$16 sps:$4 sm:$0xff]  }
  0x7a   :  { %373 = vmatprep.subr.bf16.mxu0 %v1947_v13  ;;  %446 = vmatprep.subr.bf16.mxu1 %v1949_v14  ;;  %v1977_v35 = vld [vmem:[#allocation5] sm:$0xff]   ;;  %v2529_v37 = vld [vmem:[#allocation13 + $0x8] ss:$16 sps:$4 sm:$0xff]   ;;  %v2535_v39 = vld [vmem:[#allocation13 + $0x2c] ss:$16 sps:$4 sm:$0xff]   ;;  %v164_v9 = vshrl.u32 %v163_v8, 7 }
  0x7b   :  { %v2527_v36 = vld [vmem:[#allocation13] ss:$16 sps:$4 sm:$0xff]   ;;  %v2533_v38 = vld [vmem:[#allocation13 + $0x24] ss:$16 sps:$4 sm:$0xff]   ;;  %v2541_v41 = vld [vmem:[#allocation13 + $0x28] ss:$16 sps:$4 sm:$0xff]  }
  0x7c   :  { %v2537_v40 = vld [vmem:[#allocation13 + $0x20] ss:$16 sps:$4 sm:$0xff]   ;;  %v2545_v42 = vld [vmem:[#allocation13 + $0x44] ss:$16 sps:$4 sm:$0xff]   ;;  %v2547_v43 = vld [vmem:[#allocation13 + $0x4c] ss:$16 sps:$4 sm:$0xff]  }
  0x7d   :  { %374 = vmatpush1.bf16.msra.mxu0 %v1951_v15  ;;  %447 = vmatpush1.bf16.msra.mxu1 %v1952_v16  ;;  %v2551_v45 = vld [vmem:[#allocation13 + $0x40] ss:$16 sps:$4 sm:$0xff]   ;;  %v2553_v46 = vld [vmem:[#allocation13 + $0x48] ss:$16 sps:$4 sm:$0xff]   ;;  %v2557_v47 = vld [vmem:[#allocation13 + $0x64] ss:$16 sps:$4 sm:$0xff]  }
  0x7e   :  { %375 = vmatprep.subr.bf16.mxu0 %v1953_v17  ;;  %448 = vmatprep.subr.bf16.mxu1 %v1955_v18  ;;  %v2561_v48 = vld [vmem:[#allocation13 + $0x6c] ss:$16 sps:$4 sm:$0xff]   ;;  %v2563_v49 = vld [vmem:[#allocation13 + $0x60] ss:$16 sps:$4 sm:$0xff]   ;;  %v2565_v50 = vld [vmem:[#allocation13 + $0x68] ss:$16 sps:$4 sm:$0xff]  }
  0x7f   :  { %v2569_v51 = vld [vmem:[#allocation13 + $0x84] ss:$16 sps:$4 sm:$0xff]   ;;  %v2573_v52 = vld [vmem:[#allocation13 + $0x8c] ss:$16 sps:$4 sm:$0xff]   ;;  %v2577_v54 = vld [vmem:[#allocation13 + $0x80] ss:$16 sps:$4 sm:$0xff]  }
  0x80   :  { %v2003_v53 = vld [vmem:[#allocation5 + $0x10] sm:$0xff]   ;;  %v2579_v55 = vld [vmem:[#allocation13 + $0x88] ss:$16 sps:$4 sm:$0xff]   ;;  %v2583_v57 = vld [vmem:[#allocation13 + $0xac] ss:$16 sps:$4 sm:$0xff]   ;;  %v173_v10 = vsub.s32 2, %v164_v9 }
  0x81   :  { %376 = vmatpush1.bf16.msra.mxu0 %v1957_v19  ;;  %449 = vmatpush1.bf16.msra.mxu1 %v1958_v20  ;;  %v2581_v56 = vld [vmem:[#allocation13 + $0xa4] ss:$16 sps:$4 sm:$0xff]   ;;  %v2589_v58 = vld [vmem:[#allocation13 + $0xa0] ss:$16 sps:$4 sm:$0xff]   ;;  %v2593_v59 = vld [vmem:[#allocation13 + $0xa8] ss:$16 sps:$4 sm:$0xff]  }
  0x82   :  { %377 = vmatprep.subr.bf16.mxu0 %v1959_v21  ;;  %450 = vmatprep.subr.bf16.mxu1 %v1961_v22  ;;  %v2597_v60 = vld [vmem:[#allocation13 + $0xc4] ss:$16 sps:$4 sm:$0xff]   ;;  %v2599_v61 = vld [vmem:[#allocation13 + $0xcc] ss:$16 sps:$4 sm:$0xff]   ;;  %v2605_v63 = vld [vmem:[#allocation13 + $0xc0] ss:$16 sps:$4 sm:$0xff]  }
  0x83   :  { %v2016_v62 = vld [vmem:[#allocation5 + $0x18] sm:$0xff]   ;;  %v2611_v2 = vld [vmem:[#allocation13 + $0xe4] ss:$16 sps:$4 sm:$0xff]   ;;  %v2617_v4 = vld [vmem:[#allocation13 + $0xe0] ss:$16 sps:$4 sm:$0xff]   ;;  %v177_v11 = vsub.s32 3, %v164_v9 }
  0x84   :  { %v2607_v1 = vld [vmem:[#allocation13 + $0xc8] ss:$16 sps:$4 sm:$0xff]   ;;  %v2613_v3 = vld [vmem:[#allocation13 + $0xec] ss:$16 sps:$4 sm:$0xff]   ;;  %v117_v6 = vld [vmem:[#allocation8] sm:$0xff]  ;;  %v165_v12 = vsub.s32 0, %v164_v9 }
  0x85   :  { %378 = vmatpush1.bf16.msra.mxu0 %v1963_v23  ;;  %451 = vmatpush1.bf16.msra.mxu1 %v1964_v24  ;;  %v2619_v5 = vld [vmem:[#allocation13 + $0xe8] ss:$16 sps:$4 sm:$0xff]   ;;  %v586_v7 = vpack.c.bf16 %v117_v6, %v117_v6  ;;  %v161_v13 = vld [vmem:[%s3084_s5] sm:$0xf]  ;;  %v169_v14 = vsub.s32 1, %v164_v9  ;;  %vm2371_vm0 = vmmov 0  }
  0x86   :  { %379 = vmatprep.subr.bf16.mxu0 %v1965_v25  ;;  %452 = vmatprep.subr.bf16.mxu1 %v1967_v26  ;;  %v2666_v15 = vrot.slane %v161_v13, %v173_v10  ;;  %v2672_v18 = vrot.slane %v161_v13, %v177_v11  ;;  %v166_v19 = vrot.slane %v161_v13, %v165_v12  ;;  %s2372_s5 = smov [#allocation17]  }
  0x87   :  { %v170_v22 = vrot.slane %v161_v13, %v169_v14  ;;  %s1771_s3 = sshll.u32 %s2372_s5, 4  ;;  %s1772_s3 = int_to_ptr.vmem [resolvable:$true] %s1771_s3 }
  0x88   :  { %s2281_s16 = scalar_lea.vmem %s1772_s3, 128  ;;  %p2286_p7 = scmp.lt.s32.totalorder %s1772_s3, %s1772_s3 }
  0x89   :  { %380 = vmatpush1.bf16.msra.mxu0 %v1969_v27  ;;  %453 = vmatpush1.bf16.msra.mxu1 %v1970_v28  ;;  %p2282_p6 = scmp.ne.s32.totalorder %s1772_s3, %s2281_s16  ;;  %p2287_p8 = scmp.lt.s32.totalorder %s2281_s16, %s2281_s16 }
  0x8a   :  { %381 = vmatprep.subr.bf16.mxu0 %v1971_v29  ;;  %454 = vmatprep.subr.bf16.mxu1 %v1973_v30 }
  0x8b   :  { %p2288_p9 = por %p2287_p8, %p2286_p7 }
  0x8d   :  { %382 = vmatpush1.bf16.msra.mxu0 %v1975_v31  ;;  %455 = vmatpush1.bf16.msra.mxu1 %v1976_v32  ;;  %p2289_p10 = pnand %p2288_p9, %p2282_p6 }
  0x8e   :  { %747 = vmatprep.subr.bf16.mxu0 %v2523_v33  ;;  %788 = vmatprep.subr.bf16.mxu1 %v2525_v34 }
  0x90   :  { %400 = vmatmul.mubr.bf16.vlgmr.msra.gmra.mrb[0].mxu0 %v1977_v35  ;;  %473 = vmatmul.mubr.bf16.vlgmr.msra.gmra.mrb[0].mxu1 %v1977_v35 }
  0x91   :  { %748 = vmatpush1.bf16.msra.mxu0 %v2527_v36  ;;  %789 = vmatpush1.bf16.msra.mxu1 %v2529_v37 }
  0x92   :  { %749 = vmatprep.subr.bf16.mxu0 %v2533_v38  ;;  %790 = vmatprep.subr.bf16.mxu1 %v2535_v39 }
  0x93   :  { %409 = vmatprep.mubr.bf16.mxu0 %v3090_v0  ;;  %482 = vmatprep.mubr.bf16.mxu1 %v3090_v0 }
  0x95   :  { %750 = vmatpush1.bf16.msra.mxu0 %v2537_v40  ;;  %791 = vmatpush1.bf16.msra.mxu1 %v2541_v41 }
  0x96   :  { %751 = vmatprep.subr.bf16.mxu0 %v2545_v42  ;;  %792 = vmatprep.subr.bf16.mxu1 %v2547_v43 }
  0x98   :  { %410 = vmatmul.mubr.bf16.gmra.mrb[4].mxu0 %v1990_v44  ;;  %483 = vmatmul.mubr.bf16.gmra.mrb[4].mxu1 %v1990_v44 }
  0x99   :  { %752 = vmatpush1.bf16.msra.mxu0 %v2551_v45  ;;  %793 = vmatpush1.bf16.msra.mxu1 %v2553_v46 }
  0x9a   :  { %753 = vmatprep.subr.bf16.mxu0 %v2557_v47  ;;  %794 = vmatprep.subr.bf16.mxu1 %v2561_v48 }
  0x9b   :  { %419 = vmatprep.mubr.bf16.mxu0 %v3090_v0  ;;  %492 = vmatprep.mubr.bf16.mxu1 %v3090_v0 }
  0x9d   :  { %754 = vmatpush1.bf16.msra.mxu0 %v2563_v49  ;;  %795 = vmatpush1.bf16.msra.mxu1 %v2565_v50 }
  0x9e   :  { %755 = vmatprep.subr.bf16.mxu0 %v2569_v51  ;;  %796 = vmatprep.subr.bf16.mxu1 %v2573_v52 }
  0xa0   :  { %420 = vmatmul.mubr.bf16.gmra.mrb[8].mxu0 %v2003_v53  ;;  %493 = vmatmul.mubr.bf16.gmra.mrb[8].mxu1 %v2003_v53 }
  0xa1   :  { %756 = vmatpush1.bf16.msra.mxu0 %v2577_v54  ;;  %797 = vmatpush1.bf16.msra.mxu1 %v2579_v55 }
  0xa2   :  { %757 = vmatprep.subr.bf16.mxu0 %v2581_v56  ;;  %798 = vmatprep.subr.bf16.mxu1 %v2583_v57 }
  0xa3   :  { %429 = vmatprep.mubr.bf16.mxu0 %v3090_v0  ;;  %502 = vmatprep.mubr.bf16.mxu1 %v3090_v0 }
  0xa5   :  { %758 = vmatpush1.bf16.msra.mxu0 %v2589_v58  ;;  %799 = vmatpush1.bf16.msra.mxu1 %v2593_v59 }
  0xa6   :  { %759 = vmatprep.subr.bf16.mxu0 %v2597_v60  ;;  %800 = vmatprep.subr.bf16.mxu1 %v2599_v61 }
  0xa8   :  { %430 = vmatmul.mubr.bf16.gmra.mrb[12].mxu0 %v2016_v62  ;;  %503 = vmatmul.mubr.bf16.gmra.mrb[12].mxu1 %v2016_v62 }
  0xa9   :  { %760 = vmatpush1.bf16.msra.mxu0 %v2605_v63  ;;  %801 = vmatpush1.bf16.msra.mxu1 %v2607_v1 }
  0xaa   :  { %761 = vmatprep.subr.bf16.mxu0 %v2611_v2  ;;  %802 = vmatprep.subr.bf16.mxu1 %v2613_v3 }
  0xab   :  { %779 = vmatprep.mubr.bf16.mxu0 %v3090_v0  ;;  %820 = vmatprep.mubr.bf16.mxu1 %v3090_v0 }
  0xad   :  { %762 = vmatpush1.bf16.msra.mxu0 %v2617_v4  ;;  %803 = vmatpush1.bf16.msra.mxu1 %v2619_v5 }
  0xae   :  { %859 = vmatprep.subr.bf16.mxu0 %v2523_v33  ;;  %900 = vmatprep.subr.bf16.mxu1 %v2525_v34 }
  0xb0   :  { %780 = vmatmul.mubr.bf16.vlgmr.msra.gmra.mrb[16].mxu0 %v586_v7  ;;  %821 = vmatmul.mubr.bf16.vlgmr.msra.gmra.mrb[16].mxu1 %v586_v7 }
  0xb1   :  { %860 = vmatpush1.bf16.msra.mxu0 %v2527_v36  ;;  %901 = vmatpush1.bf16.msra.mxu1 %v2529_v37 }
  0xb2   :  { %861 = vmatprep.subr.bf16.mxu0 %v2533_v38  ;;  %902 = vmatprep.subr.bf16.mxu1 %v2535_v39 }
  0xb3   :  { %891 = vmatprep.mubr.bf16.mxu0 %v3090_v0  ;;  %932 = vmatprep.mubr.bf16.mxu1 %v3090_v0 }
  0xb5   :  { %862 = vmatpush1.bf16.msra.mxu0 %v2537_v40  ;;  %903 = vmatpush1.bf16.msra.mxu1 %v2541_v41 }
  0xb6   :  { %863 = vmatprep.subr.bf16.mxu0 %v2545_v42  ;;  %904 = vmatprep.subr.bf16.mxu1 %v2547_v43 }
  0xb9   :  { %864 = vmatpush1.bf16.msra.mxu0 %v2551_v45  ;;  %905 = vmatpush1.bf16.msra.mxu1 %v2553_v46 }
  0xba   :  { %865 = vmatprep.subr.bf16.mxu0 %v2557_v47  ;;  %906 = vmatprep.subr.bf16.mxu1 %v2561_v48 }
  0xbd   :  { %866 = vmatpush1.bf16.msra.mxu0 %v2563_v49  ;;  %907 = vmatpush1.bf16.msra.mxu1 %v2565_v50 }
  0xbe   :  { %867 = vmatprep.subr.bf16.mxu0 %v2569_v51  ;;  %908 = vmatprep.subr.bf16.mxu1 %v2573_v52 }
  0xc1   :  { %868 = vmatpush1.bf16.msra.mxu0 %v2577_v54  ;;  %909 = vmatpush1.bf16.msra.mxu1 %v2579_v55 }
  0xc2   :  { %869 = vmatprep.subr.bf16.mxu0 %v2581_v56  ;;  %910 = vmatprep.subr.bf16.mxu1 %v2583_v57 }
  0xc5   :  { %870 = vmatpush1.bf16.msra.mxu0 %v2589_v58  ;;  %911 = vmatpush1.bf16.msra.mxu1 %v2593_v59 }
  0xc6   :  { %871 = vmatprep.subr.bf16.mxu0 %v2597_v60  ;;  %912 = vmatprep.subr.bf16.mxu1 %v2599_v61 }
  0xc9   :  { %872 = vmatpush1.bf16.msra.mxu0 %v2605_v63  ;;  %913 = vmatpush1.bf16.msra.mxu1 %v2607_v1 }
  0xca   :  { %873 = vmatprep.subr.bf16.mxu0 %v2611_v2  ;;  %914 = vmatprep.subr.bf16.mxu1 %v2613_v3 }
  0xcd   :  { %874 = vmatpush1.bf16.msra.mxu0 %v2617_v4  ;;  %915 = vmatpush1.bf16.msra.mxu1 %v2619_v5 }
  0xce   :  { %971 = vmatprep.subr.bf16.mxu0 %v2523_v33  ;;  %1012 = vmatprep.subr.bf16.mxu1 %v2525_v34 }
 0x163   :  { %v2668_v16 = vpop.f32.mrb[0].mxu0  ;;  %v2670_v17 = vpop.f32.mrb[0].mxu1 }
 0x164   :  { %v403_v20 = vpop.f32.mrb[1].mxu0  ;;  %v476_v21 = vpop.f32.mrb[1].mxu1 }
 0x165   :  { %v405_v23 = vpop.f32.mrb[2].mxu0  ;;  %v478_v24 = vpop.f32.mrb[2].mxu1 }
 0x166   :  { %v2674_v25 = vadd.f32 %v405_v23, %v166_v19  ;;  %v407_v26 = vpop.f32.mrb[3].mxu0  ;;  %v2677_v27 = vadd.f32 %v478_v24, %v2666_v15  ;;  %v480_v28 = vpop.f32.mrb[3].mxu1 }
 0x167   :  { %v2679_v29 = vadd.f32 %v407_v26, %v170_v22  ;;  %v2682_v30 = vadd.f32 %v480_v28, %v2672_v18 }
 0x16b   :  { %v411_v31 = vpop.f32.mrb[4].mxu0  ;;  %v484_v32 = vpop.f32.mrb[4].mxu1 }
 0x16c   :  { %v2684_v35 = vadd.f32 %v411_v31, %v166_v19  ;;  %v413_v44 = vpop.f32.mrb[5].mxu0  ;;  %v2687_v53 = vadd.f32 %v484_v32, %v2666_v15  ;;  %v486_v62 = vpop.f32.mrb[5].mxu1 }
 0x16d   :  { %v2689_v6 = vadd.f32 %v413_v44, %v170_v22  ;;  %v415_v7 = vpop.f32.mrb[6].mxu0  ;;  %v2692_v8 = vadd.f32 %v486_v62, %v2672_v18  ;;  %v488_v9 = vpop.f32.mrb[6].mxu1 }
 0x16e   :  { %v2694_v10 = vadd.f32 %v415_v7, %v166_v19  ;;  %v417_v11 = vpop.f32.mrb[7].mxu0  ;;  %v2697_v12 = vadd.f32 %v488_v9, %v2666_v15  ;;  %v490_v13 = vpop.f32.mrb[7].mxu1 }
 0x16f   :  { %3092 = vst [vmem:[#allocation26_spill] sm:$0xff] %v2692_v8  ;;  %v2699_v14 = vadd.f32 %v417_v11, %v170_v22  ;;  %v2702_v23 = vadd.f32 %v490_v13, %v2672_v18 }
 0x170   :  { %3093 = vst [vmem:[#allocation27_spill] sm:$0xff] %v2694_v10  ;;  %3094 = vst [vmem:[#allocation28_spill] sm:$0xff] %v2697_v12 }
 0x171   :  { %3095 = vst [vmem:[#allocation29_spill] sm:$0xff] %v2699_v14  ;;  %3096 = vst [vmem:[#allocation30_spill] sm:$0xff] %v2702_v23 }
 0x173   :  { %v421_v24 = vpop.f32.mrb[8].mxu0  ;;  %v494_v26 = vpop.f32.mrb[8].mxu1 }
 0x174   :  { %v2704_v28 = vadd.f32 %v421_v24, %v166_v19  ;;  %v423_v31 = vpop.f32.mrb[9].mxu0  ;;  %v2707_v32 = vadd.f32 %v494_v26, %v2666_v15  ;;  %v496_v44 = vpop.f32.mrb[9].mxu1 }
 0x175   :  { %v2709_v62 = vadd.f32 %v423_v31, %v170_v22  ;;  %v425_v7 = vpop.f32.mrb[10].mxu0  ;;  %v2712_v9 = vadd.f32 %v496_v44, %v2672_v18  ;;  %v498_v11 = vpop.f32.mrb[10].mxu1 }
 0x176   :  { %3097 = vst [vmem:[#allocation31_spill] sm:$0xff] %v2704_v28  ;;  %3098 = vst [vmem:[#allocation32_spill] sm:$0xff] %v2707_v32  ;;  %v2714_v0 = vadd.f32 %v425_v7, %v166_v19  ;;  %v427_v13 = vpop.f32.mrb[11].mxu0  ;;  %v2717_v23 = vadd.f32 %v498_v11, %v2666_v15  ;;  %v500_v24 = vpop.f32.mrb[11].mxu1 }
 0x177   :  { %3099 = vst [vmem:[#allocation33_spill] sm:$0xff] %v2709_v62  ;;  %3100 = vst [vmem:[#allocation34_spill] sm:$0xff] %v2712_v9  ;;  %v2719_v28 = vadd.f32 %v427_v13, %v170_v22  ;;  %v2722_v26 = vadd.f32 %v500_v24, %v2672_v18 }
 0x178   :  { %3101 = vst [vmem:[#allocation35_spill] sm:$0xff] %v2714_v0  ;;  %3102 = vst [vmem:[#allocation36_spill] sm:$0xff] %v2717_v23 }
 0x179   :  { %3103 = vst [vmem:[#allocation37_spill] sm:$0xff] %v2719_v28  ;;  %3104 = vst [vmem:[#allocation38_spill] sm:$0xff] %v2722_v26 }
 0x17b   :  { %v431_v32 = vpop.f32.mrb[12].mxu0  ;;  %v504_v31 = vpop.f32.mrb[12].mxu1 }
 0x17c   :  { %v2724_v62 = vadd.f32 %v431_v32, %v166_v19  ;;  %v433_v14 = vpop.f32.mrb[13].mxu0  ;;  %v2727_v44 = vadd.f32 %v504_v31, %v2666_v15  ;;  %v506_v7 = vpop.f32.mrb[13].mxu1 }
 0x17d   :  { %v2729_v0 = vadd.f32 %v433_v14, %v170_v22  ;;  %v435_v9 = vpop.f32.mrb[14].mxu0  ;;  %v2732_v11 = vadd.f32 %v506_v7, %v2672_v18  ;;  %v508_v13 = vpop.f32.mrb[14].mxu1  ;;  %v402_v14 = vadd.f32 %v2668_v16, %v166_v19  ;;  %v404_v7 = vadd.f32 %v403_v20, %v170_v22 }
 0x17e   :  { %3105 = vst [vmem:[#allocation39_spill] sm:$0xff] %v2724_v62  ;;  %3106 = vst [vmem:[#allocation40_spill] sm:$0xff] %v2727_v44  ;;  %v2734_v28 = vadd.f32 %v435_v9, %v166_v19  ;;  %v437_v24 = vpop.f32.mrb[15].mxu0  ;;  %v2737_v26 = vadd.f32 %v508_v13, %v2666_v15  ;;  %v510_v32 = vpop.f32.mrb[15].mxu1 }
 0x17f   :  { %3107 = vst [vmem:[#allocation41_spill] sm:$0xff] %v2729_v0  ;;  %3108 = vst [vmem:[#allocation42_spill] sm:$0xff] %v2732_v11  ;;  %v2739_v62 = vadd.f32 %v437_v24, %v170_v22  ;;  %v2742_v31 = vadd.f32 %v510_v32, %v2672_v18  ;;  %v475_v0 = vadd.f32 %v2670_v17, %v2666_v15 }
 0x180   :  { %3109 = vst [vmem:[#allocation43_spill] sm:$0xff] %v2734_v28  ;;  %3110 = vst [vmem:[#allocation44_spill] sm:$0xff] %v2737_v26  ;;  %v477_v11 = vadd.f32 %v476_v21, %v2672_v18  ;;  %v119_v21 = vld [vmem:[#allocation10] sm:$0xff] }
 0x181   :  { %3111 = vst [vmem:[#allocation45_spill] sm:$0xff] %v2739_v62  ;;  %3112 = vst [vmem:[#allocation46_spill] sm:$0xff] %v2742_v31 }
 0x183   :  { %v781_v9 = vpop.f32.mrb[16].mxu0  ;;  %v822_v28 = vpop.f32.mrb[16].mxu1 }
 0x184   :  { %v829_v44 = vadd.f32 %v781_v9, %v402_v14  ;;  %v831_v23 = vadd.f32 %v822_v28, %v475_v0  ;;  %v783_v13 = vpop.f32.mrb[17].mxu0  ;;  %v824_v26 = vpop.f32.mrb[17].mxu1  ;;  %v3113_v14 = vmov 0  }
 0x185   :  { %v830_v12 = vadd.f32 %v783_v13, %v404_v7  ;;  %v832_v24 = vadd.f32 %v824_v26, %v477_v11  ;;  %v785_v62 = vpop.f32.mrb[18].mxu0  ;;  %v826_v10 = vpop.f32.mrb[18].mxu1 }
 0x186   :  { %v833_v32 = vmul.f32 0.5, %v829_v44  ;;  %v786_v31 = vpop.f32.mrb[19].mxu0  ;;  %v827_v8 = vpop.f32.mrb[19].mxu1 }
 0x187   :  { %v837_v16 = vmul.f32 0.5, %v830_v12  ;;  %v842_v15 = vmul.f32 0.5, %v832_v24 }
 0x188   :  { %2037 = vtanh.f32 %v833_v32 }
 0x189   :  { %2039 = vtanh.f32 %v837_v16 }
 0x18a   :  { %2041 = vtanh.f32 %v831_v23 }
 0x18b   :  { %2043 = vtanh.f32 %v842_v15 }
 0x192   :  { %v2038_v17 = vpop.eup %2037 }
 0x193   :  { %v2040_v18 = vpop.eup %2039  ;;  %v835_v19 = vmul.f32 0.5, %v2038_v17 }
 0x194   :  { %v839_v20 = vmul.f32 0.5, %v2040_v18  ;;  %v2042_v22 = vpop.eup %2041 }
 0x195   :  { %v836_v0 = vadd.f32 0.5, %v835_v19  ;;  %v2044_v8 = vpop.eup %2043 }
 0x196   :  { %v840_v28 = vadd.f32 0.5, %v839_v20  ;;  %v844_v12 = vmul.f32 0.5, %v2044_v8 }
 0x197   :  { %v847_v26 = vmul.f32 %v2042_v22, %v836_v0 }
 0x198   :  { %v846_v62 = vmul.f32 %v840_v28, %v119_v21  ;;  %v845_v44 = vadd.f32 0.5, %v844_v12 }
 0x19a   :  { %v2748_v10 = vadd.f32 %v847_v26, %v846_v62 }
 0x19c   :  { %2045 = vtanh.f32 %v2748_v10 }
 0x1a6   :  { %v2046_v23 = vpop.eup %2045 }
 0x1a7   :  { %v850_v11 = vmul.f32 %v2046_v23, %v845_v44 }
 0x1a9   :  { %v858_v31 = vpack.c.bf16 %v850_v11, %v850_v11 }
 0x1ab   :  { %892 = vmatmul.mubr.bf16.vlgmr.msra.gmra.mrb[20].mxu0 %v858_v31  ;;  %933 = vmatmul.mubr.bf16.vlgmr.msra.gmra.mrb[20].mxu1 %v858_v31 }
 0x1ac   :  { %972 = vmatpush1.bf16.msra.mxu0 %v2527_v36  ;;  %1013 = vmatpush1.bf16.msra.mxu1 %v2529_v37 }
 0x1ad   :  { %973 = vmatprep.subr.bf16.mxu0 %v2533_v38  ;;  %1014 = vmatprep.subr.bf16.mxu1 %v2535_v39 }
 0x1ae   :  { %1003 = vmatprep.mubr.bf16.mxu0 %v3113_v14  ;;  %1044 = vmatprep.mubr.bf16.mxu1 %v3113_v14 }
 0x1b0   :  { %974 = vmatpush1.bf16.msra.mxu0 %v2537_v40  ;;  %1015 = vmatpush1.bf16.msra.mxu1 %v2541_v41 }
 0x1b1   :  { %975 = vmatprep.subr.bf16.mxu0 %v2545_v42  ;;  %1016 = vmatprep.subr.bf16.mxu1 %v2547_v43 }
 0x1b4   :  { %976 = vmatpush1.bf16.msra.mxu0 %v2551_v45  ;;  %1017 = vmatpush1.bf16.msra.mxu1 %v2553_v46 }
 0x1b5   :  { %977 = vmatprep.subr.bf16.mxu0 %v2557_v47  ;;  %1018 = vmatprep.subr.bf16.mxu1 %v2561_v48 }
 0x1b8   :  { %978 = vmatpush1.bf16.msra.mxu0 %v2563_v49  ;;  %1019 = vmatpush1.bf16.msra.mxu1 %v2565_v50 }
 0x1b9   :  { %979 = vmatprep.subr.bf16.mxu0 %v2569_v51  ;;  %1020 = vmatprep.subr.bf16.mxu1 %v2573_v52 }
 0x1bc   :  { %980 = vmatpush1.bf16.msra.mxu0 %v2577_v54  ;;  %1021 = vmatpush1.bf16.msra.mxu1 %v2579_v55 }
 0x1bd   :  { %981 = vmatprep.subr.bf16.mxu0 %v2581_v56  ;;  %1022 = vmatprep.subr.bf16.mxu1 %v2583_v57 }
 0x1c0   :  { %982 = vmatpush1.bf16.msra.mxu0 %v2589_v58  ;;  %1023 = vmatpush1.bf16.msra.mxu1 %v2593_v59 }
 0x1c1   :  { %983 = vmatprep.subr.bf16.mxu0 %v2597_v60  ;;  %1024 = vmatprep.subr.bf16.mxu1 %v2599_v61 }
 0x1c4   :  { %984 = vmatpush1.bf16.msra.mxu0 %v2605_v63  ;;  %1025 = vmatpush1.bf16.msra.mxu1 %v2607_v1 }
 0x1c5   :  { %985 = vmatprep.subr.bf16.mxu0 %v2611_v2  ;;  %1026 = vmatprep.subr.bf16.mxu1 %v2613_v3 }
 0x1c8   :  { %986 = vmatpush1.bf16.msra.mxu0 %v2617_v4  ;;  %1027 = vmatpush1.bf16.msra.mxu1 %v2619_v5 }
 0x1c9   :  { %1083 = vmatprep.subr.bf16.mxu0 %v2523_v33  ;;  %1124 = vmatprep.subr.bf16.mxu1 %v2525_v34 }
 0x27e   :  { %v893_v7 = vpop.f32.mrb[20].mxu0  ;;  %v934_v9 = vpop.f32.mrb[20].mxu1 }
 0x27f   :  { %v941_v13 = vadd.f32 %v893_v7, %v2674_v25  ;;  %v943_v24 = vadd.f32 %v934_v9, %v2677_v27  ;;  %v895_v32 = vpop.f32.mrb[21].mxu0  ;;  %v936_v16 = vpop.f32.mrb[21].mxu1 }
 0x280   :  { %v942_v15 = vadd.f32 %v895_v32, %v2679_v29  ;;  %v944_v17 = vadd.f32 %v936_v16, %v2682_v30  ;;  %v897_v18 = vpop.f32.mrb[22].mxu0  ;;  %v938_v19 = vpop.f32.mrb[22].mxu1 }
 0x281   :  { %v945_v20 = vmul.f32 0.5, %v941_v13  ;;  %v898_v0 = vpop.f32.mrb[23].mxu0  ;;  %v939_v21 = vpop.f32.mrb[23].mxu1 }
 0x282   :  { %v949_v22 = vmul.f32 0.5, %v942_v15  ;;  %v954_v28 = vmul.f32 0.5, %v944_v17 }
 0x283   :  { %2047 = vtanh.f32 %v945_v20  ;;  %v3114_v20 = vld [vmem:[#allocation26_spill] sm:$0xff] }
 0x284   :  { %2049 = vtanh.f32 %v949_v22 }
 0x285   :  { %2051 = vtanh.f32 %v943_v24 }
 0x286   :  { %2053 = vtanh.f32 %v954_v28 }
 0x28d   :  { %v2048_v26 = vpop.eup %2047 }
 0x28e   :  { %v2050_v25 = vpop.eup %2049  ;;  %v947_v62 = vmul.f32 0.5, %v2048_v26 }
 0x28f   :  { %v951_v27 = vmul.f32 0.5, %v2050_v25  ;;  %v2052_v12 = vpop.eup %2051 }
 0x290   :  { %v948_v8 = vadd.f32 0.5, %v947_v62  ;;  %v2054_v11 = vpop.eup %2053 }
 0x291   :  { %v952_v29 = vadd.f32 0.5, %v951_v27  ;;  %v956_v31 = vmul.f32 0.5, %v2054_v11 }
 0x292   :  { %v959_v44 = vmul.f32 %v2052_v12, %v948_v8 }
 0x293   :  { %v958_v30 = vmul.f32 %v952_v29, %v2748_v10  ;;  %v957_v7 = vadd.f32 0.5, %v956_v31 }
 0x295   :  { %v2790_v23 = vadd.f32 %v959_v44, %v958_v30 }
 0x297   :  { %2055 = vtanh.f32 %v2790_v23 }
 0x2a1   :  { %v2056_v9 = vpop.eup %2055 }
 0x2a2   :  { %v962_v13 = vmul.f32 %v2056_v9, %v957_v7 }
 0x2a4   :  { %v970_v24 = vpack.c.bf16 %v962_v13, %v962_v13 }
 0x2a6   :  { %1004 = vmatmul.mubr.bf16.vlgmr.msra.gmra.mrb[24].mxu0 %v970_v24  ;;  %1045 = vmatmul.mubr.bf16.vlgmr.msra.gmra.mrb[24].mxu1 %v970_v24 }
 0x2a7   :  { %1084 = vmatpush1.bf16.msra.mxu0 %v2527_v36  ;;  %1125 = vmatpush1.bf16.msra.mxu1 %v2529_v37 }
 0x2a8   :  { %1085 = vmatprep.subr.bf16.mxu0 %v2533_v38  ;;  %1126 = vmatprep.subr.bf16.mxu1 %v2535_v39 }
 0x2a9   :  { %1115 = vmatprep.mubr.bf16.mxu0 %v3113_v14  ;;  %1156 = vmatprep.mubr.bf16.mxu1 %v3113_v14 }
 0x2ab   :  { %1086 = vmatpush1.bf16.msra.mxu0 %v2537_v40  ;;  %1127 = vmatpush1.bf16.msra.mxu1 %v2541_v41 }
 0x2ac   :  { %1087 = vmatprep.subr.bf16.mxu0 %v2545_v42  ;;  %1128 = vmatprep.subr.bf16.mxu1 %v2547_v43 }
 0x2af   :  { %1088 = vmatpush1.bf16.msra.mxu0 %v2551_v45  ;;  %1129 = vmatpush1.bf16.msra.mxu1 %v2553_v46 }
 0x2b0   :  { %1089 = vmatprep.subr.bf16.mxu0 %v2557_v47  ;;  %1130 = vmatprep.subr.bf16.mxu1 %v2561_v48 }
 0x2b3   :  { %1090 = vmatpush1.bf16.msra.mxu0 %v2563_v49  ;;  %1131 = vmatpush1.bf16.msra.mxu1 %v2565_v50 }
 0x2b4   :  { %1091 = vmatprep.subr.bf16.mxu0 %v2569_v51  ;;  %1132 = vmatprep.subr.bf16.mxu1 %v2573_v52 }
 0x2b7   :  { %1092 = vmatpush1.bf16.msra.mxu0 %v2577_v54  ;;  %1133 = vmatpush1.bf16.msra.mxu1 %v2579_v55 }
 0x2b8   :  { %1093 = vmatprep.subr.bf16.mxu0 %v2581_v56  ;;  %1134 = vmatprep.subr.bf16.mxu1 %v2583_v57 }
 0x2bb   :  { %1094 = vmatpush1.bf16.msra.mxu0 %v2589_v58  ;;  %1135 = vmatpush1.bf16.msra.mxu1 %v2593_v59 }
 0x2bc   :  { %1095 = vmatprep.subr.bf16.mxu0 %v2597_v60  ;;  %1136 = vmatprep.subr.bf16.mxu1 %v2599_v61 }
 0x2bf   :  { %1096 = vmatpush1.bf16.msra.mxu0 %v2605_v63  ;;  %1137 = vmatpush1.bf16.msra.mxu1 %v2607_v1 }
 0x2c0   :  { %1097 = vmatprep.subr.bf16.mxu0 %v2611_v2  ;;  %1138 = vmatprep.subr.bf16.mxu1 %v2613_v3 }
 0x2c3   :  { %1098 = vmatpush1.bf16.msra.mxu0 %v2617_v4  ;;  %1139 = vmatpush1.bf16.msra.mxu1 %v2619_v5 }
 0x2c4   :  { %1195 = vmatprep.subr.bf16.mxu0 %v2523_v33  ;;  %1236 = vmatprep.subr.bf16.mxu1 %v2525_v34 }
 0x379   :  { %v1005_v10 = vpop.f32.mrb[24].mxu0  ;;  %v1046_v32 = vpop.f32.mrb[24].mxu1 }
 0x37a   :  { %v1053_v16 = vadd.f32 %v1005_v10, %v2684_v35  ;;  %v1055_v15 = vadd.f32 %v1046_v32, %v2687_v53  ;;  %v1007_v17 = vpop.f32.mrb[25].mxu0  ;;  %v1048_v18 = vpop.f32.mrb[25].mxu1 }
 0x37b   :  { %v1054_v19 = vadd.f32 %v1007_v17, %v2689_v6  ;;  %v1056_v0 = vadd.f32 %v1048_v18, %v3114_v20  ;;  %v1009_v21 = vpop.f32.mrb[26].mxu0  ;;  %v1050_v22 = vpop.f32.mrb[26].mxu1  ;;  %v3116_v18 = vld [vmem:[#allocation28_spill] sm:$0xff] }
 0x37c   :  { %v1057_v28 = vmul.f32 0.5, %v1053_v16  ;;  %v1010_v26 = vpop.f32.mrb[27].mxu0  ;;  %v1051_v25 = vpop.f32.mrb[27].mxu1  ;;  %v3117_v21 = vld [vmem:[#allocation29_spill] sm:$0xff] }
 0x37d   :  { %v1061_v62 = vmul.f32 0.5, %v1054_v19  ;;  %v1066_v27 = vmul.f32 0.5, %v1056_v0 }
 0x37e   :  { %2057 = vtanh.f32 %v1057_v28  ;;  %v3118_v28 = vld [vmem:[#allocation30_spill] sm:$0xff] }
 0x37f   :  { %2059 = vtanh.f32 %v1061_v62 }
 0x380   :  { %2061 = vtanh.f32 %v1055_v15  ;;  %v3115_v15 = vld [vmem:[#allocation27_spill] sm:$0xff] }
 0x381   :  { %2063 = vtanh.f32 %v1066_v27 }
 0x388   :  { %v2058_v8 = vpop.eup %2057 }
 0x389   :  { %v2060_v35 = vpop.eup %2059  ;;  %v1059_v12 = vmul.f32 0.5, %v2058_v8 }
 0x38a   :  { %v1063_v53 = vmul.f32 0.5, %v2060_v35  ;;  %v2062_v44 = vpop.eup %2061 }
 0x38b   :  { %v1060_v29 = vadd.f32 0.5, %v1059_v12  ;;  %v2064_v7 = vpop.eup %2063 }
 0x38c   :  { %v1064_v6 = vadd.f32 0.5, %v1063_v53  ;;  %v1068_v9 = vmul.f32 0.5, %v2064_v7 }
 0x38d   :  { %v1071_v30 = vmul.f32 %v2062_v44, %v1060_v29 }
 0x38e   :  { %v1070_v11 = vmul.f32 %v1064_v6, %v2790_v23  ;;  %v1069_v13 = vadd.f32 0.5, %v1068_v9 }
 0x390   :  { %v2832_v31 = vadd.f32 %v1071_v30, %v1070_v11 }
 0x392   :  { %2065 = vtanh.f32 %v2832_v31 }
 0x39c   :  { %v2066_v24 = vpop.eup %2065 }
 0x39d   :  { %v1074_v10 = vmul.f32 %v2066_v24, %v1069_v13 }
 0x39f   :  { %v1082_v32 = vpack.c.bf16 %v1074_v10, %v1074_v10 }
 0x3a1   :  { %1116 = vmatmul.mubr.bf16.vlgmr.msra.gmra.mrb[28].mxu0 %v1082_v32  ;;  %1157 = vmatmul.mubr.bf16.vlgmr.msra.gmra.mrb[28].mxu1 %v1082_v32 }
 0x3a2   :  { %1196 = vmatpush1.bf16.msra.mxu0 %v2527_v36  ;;  %1237 = vmatpush1.bf16.msra.mxu1 %v2529_v37 }
 0x3a3   :  { %1197 = vmatprep.subr.bf16.mxu0 %v2533_v38  ;;  %1238 = vmatprep.subr.bf16.mxu1 %v2535_v39 }
 0x3a4   :  { %1227 = vmatprep.mubr.bf16.mxu0 %v3113_v14  ;;  %1268 = vmatprep.mubr.bf16.mxu1 %v3113_v14 }
 0x3a6   :  { %1198 = vmatpush1.bf16.msra.mxu0 %v2537_v40  ;;  %1239 = vmatpush1.bf16.msra.mxu1 %v2541_v41 }
 0x3a7   :  { %1199 = vmatprep.subr.bf16.mxu0 %v2545_v42  ;;  %1240 = vmatprep.subr.bf16.mxu1 %v2547_v43 }
 0x3aa   :  { %1200 = vmatpush1.bf16.msra.mxu0 %v2551_v45  ;;  %1241 = vmatpush1.bf16.msra.mxu1 %v2553_v46 }
 0x3ab   :  { %1201 = vmatprep.subr.bf16.mxu0 %v2557_v47  ;;  %1242 = vmatprep.subr.bf16.mxu1 %v2561_v48 }
 0x3ae   :  { %1202 = vmatpush1.bf16.msra.mxu0 %v2563_v49  ;;  %1243 = vmatpush1.bf16.msra.mxu1 %v2565_v50 }
 0x3af   :  { %1203 = vmatprep.subr.bf16.mxu0 %v2569_v51  ;;  %1244 = vmatprep.subr.bf16.mxu1 %v2573_v52 }
 0x3b2   :  { %1204 = vmatpush1.bf16.msra.mxu0 %v2577_v54  ;;  %1245 = vmatpush1.bf16.msra.mxu1 %v2579_v55 }
 0x3b3   :  { %1205 = vmatprep.subr.bf16.mxu0 %v2581_v56  ;;  %1246 = vmatprep.subr.bf16.mxu1 %v2583_v57 }
 0x3b6   :  { %1206 = vmatpush1.bf16.msra.mxu0 %v2589_v58  ;;  %1247 = vmatpush1.bf16.msra.mxu1 %v2593_v59 }
 0x3b7   :  { %1207 = vmatprep.subr.bf16.mxu0 %v2597_v60  ;;  %1248 = vmatprep.subr.bf16.mxu1 %v2599_v61 }
 0x3ba   :  { %1208 = vmatpush1.bf16.msra.mxu0 %v2605_v63  ;;  %1249 = vmatpush1.bf16.msra.mxu1 %v2607_v1 }
 0x3bb   :  { %1209 = vmatprep.subr.bf16.mxu0 %v2611_v2  ;;  %1250 = vmatprep.subr.bf16.mxu1 %v2613_v3 }
 0x3be   :  { %1210 = vmatpush1.bf16.msra.mxu0 %v2617_v4  ;;  %1251 = vmatpush1.bf16.msra.mxu1 %v2619_v5 }
 0x3bf   :  { %1307 = vmatprep.subr.bf16.mxu0 %v2523_v33  ;;  %1348 = vmatprep.subr.bf16.mxu1 %v2525_v34 }
 0x474   :  { %v1117_v23 = vpop.f32.mrb[28].mxu0  ;;  %v1158_v16 = vpop.f32.mrb[28].mxu1 }
 0x475   :  { %v1165_v17 = vadd.f32 %v1117_v23, %v3115_v15  ;;  %v1167_v19 = vadd.f32 %v1158_v16, %v3116_v18  ;;  %v1119_v20 = vpop.f32.mrb[29].mxu0  ;;  %v1160_v0 = vpop.f32.mrb[29].mxu1 }
 0x476   :  { %v1166_v22 = vadd.f32 %v1119_v20, %v3117_v21  ;;  %v1168_v26 = vadd.f32 %v1160_v0, %v3118_v28  ;;  %v1121_v25 = vpop.f32.mrb[30].mxu0  ;;  %v1162_v62 = vpop.f32.mrb[30].mxu1 }
 0x477   :  { %v1169_v27 = vmul.f32 0.5, %v1165_v17  ;;  %v1122_v8 = vpop.f32.mrb[31].mxu0  ;;  %v1163_v35 = vpop.f32.mrb[31].mxu1 }
 0x478   :  { %v1173_v33 = vmul.f32 0.5, %v1166_v22  ;;  %v1178_v34 = vmul.f32 0.5, %v1168_v26 }
 0x479   :  { %2067 = vtanh.f32 %v1169_v27 }
 0x47a   :  { %2069 = vtanh.f32 %v1173_v33 }
 0x47b   :  { %2071 = vtanh.f32 %v1167_v19 }
 0x47c   :  { %2073 = vtanh.f32 %v1178_v34 }
 0x483   :  { %v2068_v12 = vpop.eup %2067 }
 0x484   :  { %v2070_v53 = vpop.eup %2069  ;;  %v1171_v29 = vmul.f32 0.5, %v2068_v12  ;;  %v2923_v12 = vld [vmem:[#allocation13] ss:$16 sps:$4 sm:$0xff]  }
 0x485   :  { %v1175_v44 = vmul.f32 0.5, %v2070_v53  ;;  %v2072_v30 = vpop.eup %2071  ;;  %v2926_v53 = vld [vmem:[#allocation13 + $0x8] ss:$16 sps:$4 sm:$0xff]  }
 0x486   :  { %v1172_v6 = vadd.f32 0.5, %v1171_v29  ;;  %v2074_v24 = vpop.eup %2073  ;;  %v2929_v29 = vld [vmem:[#allocation13 + $0x24] ss:$16 sps:$4 sm:$0xff]  }
 0x487   :  { %v1176_v11 = vadd.f32 0.5, %v1175_v44  ;;  %v1180_v10 = vmul.f32 0.5, %v2074_v24  ;;  %v2932_v44 = vld [vmem:[#allocation13 + $0x2c] ss:$16 sps:$4 sm:$0xff]   ;;  %v2955_v24 = vld [vmem:[#allocation13 + $0x64] ss:$16 sps:$4 sm:$0xff]  }
 0x488   :  { %v1183_v7 = vmul.f32 %v2072_v30, %v1172_v6  ;;  %v2937_v6 = vld [vmem:[#allocation13 + $0x20] ss:$16 sps:$4 sm:$0xff]   ;;  %v2940_v30 = vld [vmem:[#allocation13 + $0x28] ss:$16 sps:$4 sm:$0xff]  }
 0x489   :  { %v1182_v9 = vmul.f32 %v1176_v11, %v2832_v31  ;;  %v1181_v32 = vadd.f32 0.5, %v1180_v10  ;;  %v2943_v11 = vld [vmem:[#allocation13 + $0x44] ss:$16 sps:$4 sm:$0xff]   ;;  %v2958_v10 = vld [vmem:[#allocation13 + $0x6c] ss:$16 sps:$4 sm:$0xff]  }
 0x48b   :  { %v2874_v13 = vadd.f32 %v1183_v7, %v1182_v9  ;;  %v2946_v7 = vld [vmem:[#allocation13 + $0x4c] ss:$16 sps:$4 sm:$0xff]   ;;  %v2949_v9 = vld [vmem:[#allocation13 + $0x40] ss:$16 sps:$4 sm:$0xff]  }
 0x48d   :  { %2075 = vtanh.f32 %v2874_v13 }
 0x497   :  { %v2076_v23 = vpop.eup %2075 }
 0x498   :  { %v1186_v16 = vmul.f32 %v2076_v23, %v1181_v32  ;;  %v2961_v32 = vld [vmem:[#allocation13 + $0x60] ss:$16 sps:$4 sm:$0xff]   ;;  %v2964_v23 = vld [vmem:[#allocation13 + $0x68] ss:$16 sps:$4 sm:$0xff]  }
 0x49a   :  { %v1194_v15 = vpack.c.bf16 %v1186_v16, %v1186_v16  ;;  %v2967_v16 = vld [vmem:[#allocation13 + $0x84] ss:$16 sps:$4 sm:$0xff]  }
 0x49c   :  { %1228 = vmatmul.mubr.bf16.vlgmr.msra.gmra.mrb[32].mxu0 %v1194_v15  ;;  %1269 = vmatmul.mubr.bf16.vlgmr.msra.gmra.mrb[32].mxu1 %v1194_v15  ;;  %v2970_v15 = vld [vmem:[#allocation13 + $0x8c] ss:$16 sps:$4 sm:$0xff]  }
 0x49d   :  { %1308 = vmatpush1.bf16.msra.mxu0 %v2527_v36  ;;  %1349 = vmatpush1.bf16.msra.mxu1 %v2529_v37  ;;  %v2909_v36 = vld [vmem:[#allocation13 + $0x4] ss:$16 sps:$4 sm:$0xff]   ;;  %v2912_v37 = vld [vmem:[#allocation13 + $0xc] ss:$16 sps:$4 sm:$0xff]  }
 0x49e   :  { %1309 = vmatprep.subr.bf16.mxu0 %v2533_v38  ;;  %1350 = vmatprep.subr.bf16.mxu1 %v2535_v39 }
 0x49f   :  { %1339 = vmatprep.mubr.bf16.mxu0 %v3113_v14  ;;  %1380 = vmatprep.mubr.bf16.mxu1 %v3113_v14 }
 0x4a1   :  { %1310 = vmatpush1.bf16.msra.mxu0 %v2537_v40  ;;  %1351 = vmatpush1.bf16.msra.mxu1 %v2541_v41  ;;  %v3119_v40 = vld [vmem:[#allocation31_spill] sm:$0xff] }
 0x4a2   :  { %1311 = vmatprep.subr.bf16.mxu0 %v2545_v42  ;;  %1352 = vmatprep.subr.bf16.mxu1 %v2547_v43  ;;  %v3120_v42 = vld [vmem:[#allocation32_spill] sm:$0xff] }
 0x4a5   :  { %1312 = vmatpush1.bf16.msra.mxu0 %v2551_v45  ;;  %1353 = vmatpush1.bf16.msra.mxu1 %v2553_v46 }
 0x4a6   :  { %1313 = vmatprep.subr.bf16.mxu0 %v2557_v47  ;;  %1354 = vmatprep.subr.bf16.mxu1 %v2561_v48  ;;  %v3121_v47 = vld [vmem:[#allocation33_spill] sm:$0xff] }
 0x4a9   :  { %1314 = vmatpush1.bf16.msra.mxu0 %v2563_v49  ;;  %1355 = vmatpush1.bf16.msra.mxu1 %v2565_v50  ;;  %v3122_v49 = vld [vmem:[#allocation34_spill] sm:$0xff] }
 0x4aa   :  { %1315 = vmatprep.subr.bf16.mxu0 %v2569_v51  ;;  %1356 = vmatprep.subr.bf16.mxu1 %v2573_v52 }
 0x4ad   :  { %1316 = vmatpush1.bf16.msra.mxu0 %v2577_v54  ;;  %1357 = vmatpush1.bf16.msra.mxu1 %v2579_v55 }
 0x4ae   :  { %1317 = vmatprep.subr.bf16.mxu0 %v2581_v56  ;;  %1358 = vmatprep.subr.bf16.mxu1 %v2583_v57 }
 0x4b1   :  { %1318 = vmatpush1.bf16.msra.mxu0 %v2589_v58  ;;  %1359 = vmatpush1.bf16.msra.mxu1 %v2593_v59 }
 0x4b2   :  { %1319 = vmatprep.subr.bf16.mxu0 %v2597_v60  ;;  %1360 = vmatprep.subr.bf16.mxu1 %v2599_v61 }
 0x4b5   :  { %1320 = vmatpush1.bf16.msra.mxu0 %v2605_v63  ;;  %1361 = vmatpush1.bf16.msra.mxu1 %v2607_v1 }
 0x4b6   :  { %1321 = vmatprep.subr.bf16.mxu0 %v2611_v2  ;;  %1362 = vmatprep.subr.bf16.mxu1 %v2613_v3 }
 0x4b9   :  { %1322 = vmatpush1.bf16.msra.mxu0 %v2617_v4  ;;  %1363 = vmatpush1.bf16.msra.mxu1 %v2619_v5 }
 0x4ba   :  { %1419 = vmatprep.subr.bf16.mxu0 %v2909_v36  ;;  %1460 = vmatprep.subr.bf16.mxu1 %v2912_v37 }
 0x56f   :  { %v1229_v38 = vpop.f32.mrb[32].mxu0  ;;  %v1270_v39 = vpop.f32.mrb[32].mxu1 }
 0x570   :  { %v1277_v41 = vadd.f32 %v1229_v38, %v3119_v40  ;;  %v1279_v43 = vadd.f32 %v1270_v39, %v3120_v42  ;;  %v1231_v45 = vpop.f32.mrb[33].mxu0  ;;  %v1272_v46 = vpop.f32.mrb[33].mxu1  ;;  %v2973_v38 = vld [vmem:[#allocation13 + $0x80] ss:$16 sps:$4 sm:$0xff]   ;;  %v2976_v39 = vld [vmem:[#allocation13 + $0x88] ss:$16 sps:$4 sm:$0xff]  }
 0x571   :  { %v1278_v48 = vadd.f32 %v1231_v45, %v3121_v47  ;;  %v1280_v50 = vadd.f32 %v1272_v46, %v3122_v49  ;;  %v1233_v51 = vpop.f32.mrb[34].mxu0  ;;  %v1274_v52 = vpop.f32.mrb[34].mxu1  ;;  %v2979_v40 = vld [vmem:[#allocation13 + $0xa4] ss:$16 sps:$4 sm:$0xff]   ;;  %v3124_v42 = vld [vmem:[#allocation36_spill] sm:$0xff]  ;;  %v3126_v46 = vld [vmem:[#allocation38_spill] sm:$0xff] }
 0x572   :  { %v1281_v54 = vmul.f32 0.5, %v1277_v41  ;;  %v1234_v55 = vpop.f32.mrb[35].mxu0  ;;  %v1275_v56 = vpop.f32.mrb[35].mxu1  ;;  %v2982_v41 = vld [vmem:[#allocation13 + $0xac] ss:$16 sps:$4 sm:$0xff]   ;;  %v3125_v45 = vld [vmem:[#allocation37_spill] sm:$0xff] }
 0x573   :  { %v1285_v57 = vmul.f32 0.5, %v1278_v48  ;;  %v1290_v31 = vmul.f32 0.5, %v1280_v50 }
 0x574   :  { %2077 = vtanh.f32 %v1281_v54 }
 0x575   :  { %2079 = vtanh.f32 %v1285_v57 }
 0x576   :  { %2081 = vtanh.f32 %v1279_v43 }
 0x577   :  { %2083 = vtanh.f32 %v1290_v31 }
 0x57e   :  { %v2078_v17 = vpop.eup %2077 }
 0x57f   :  { %v2080_v18 = vpop.eup %2079  ;;  %v1283_v19 = vmul.f32 0.5, %v2078_v17 }
 0x580   :  { %v1287_v20 = vmul.f32 0.5, %v2080_v18  ;;  %v2082_v21 = vpop.eup %2081 }
 0x581   :  { %v1284_v0 = vadd.f32 0.5, %v1283_v19  ;;  %v2084_v62 = vpop.eup %2083 }
 0x582   :  { %v1288_v22 = vadd.f32 0.5, %v1287_v20  ;;  %v1292_v27 = vmul.f32 0.5, %v2084_v62  ;;  %v2142_v62 = vld [vmem:[#allocation13 + $0xcc] ss:$16 sps:$4 sm:$0xff]  }
 0x583   :  { %v1295_v28 = vmul.f32 %v2082_v21, %v1284_v0 }
 0x584   :  { %v1294_v26 = vmul.f32 %v1288_v22, %v2874_v13  ;;  %v1293_v8 = vadd.f32 0.5, %v1292_v27  ;;  %v2952_v13 = vld [vmem:[#allocation13 + $0x48] ss:$16 sps:$4 sm:$0xff]   ;;  %v2143_v27 = vld [vmem:[#allocation13 + $0xc0] ss:$16 sps:$4 sm:$0xff]  }
 0x586   :  { %v2920_v25 = vadd.f32 %v1295_v28, %v1294_v26  ;;  %v2140_v26 = vld [vmem:[#allocation13 + $0xa8] ss:$16 sps:$4 sm:$0xff]  }
 0x588   :  { %2085 = vtanh.f32 %v2920_v25 }
 0x592   :  { %v2086_v35 = vpop.eup %2085 }
 0x593   :  { %v1298_v33 = vmul.f32 %v2086_v35, %v1293_v8  ;;  %v2144_v8 = vld [vmem:[#allocation13 + $0xc8] ss:$16 sps:$4 sm:$0xff]   ;;  %v2145_v35 = vld [vmem:[#allocation13 + $0xe4] ss:$16 sps:$4 sm:$0xff]  }
 0x595   :  { %v1306_v34 = vpack.c.bf16 %v1298_v33, %v1298_v33  ;;  %v2146_v33 = vld [vmem:[#allocation13 + $0xec] ss:$16 sps:$4 sm:$0xff]  }
 0x597   :  { %1340 = vmatmul.mubr.bf16.vlgmr.msra.gmra.mrb[36].mxu0 %v1306_v34  ;;  %1381 = vmatmul.mubr.bf16.vlgmr.msra.gmra.mrb[36].mxu1 %v1306_v34  ;;  %v2147_v34 = vld [vmem:[#allocation13 + $0xe0] ss:$16 sps:$4 sm:$0xff]  }
 0x598   :  { %1420 = vmatpush1.bf16.msra.mxu0 %v2923_v12  ;;  %1461 = vmatpush1.bf16.msra.mxu1 %v2926_v53 }
 0x599   :  { %1421 = vmatprep.subr.bf16.mxu0 %v2929_v29  ;;  %1462 = vmatprep.subr.bf16.mxu1 %v2932_v44 }
 0x59a   :  { %1451 = vmatprep.mubr.bf16.mxu0 %v3113_v14  ;;  %1492 = vmatprep.mubr.bf16.mxu1 %v3113_v14 }
 0x59c   :  { %1422 = vmatpush1.bf16.msra.mxu0 %v2937_v6  ;;  %1463 = vmatpush1.bf16.msra.mxu1 %v2940_v30 }
 0x59d   :  { %1423 = vmatprep.subr.bf16.mxu0 %v2943_v11  ;;  %1464 = vmatprep.subr.bf16.mxu1 %v2946_v7 }
 0x5a0   :  { %1424 = vmatpush1.bf16.msra.mxu0 %v2949_v9  ;;  %1465 = vmatpush1.bf16.msra.mxu1 %v2952_v13 }
 0x5a1   :  { %1425 = vmatprep.subr.bf16.mxu0 %v2955_v24  ;;  %1466 = vmatprep.subr.bf16.mxu1 %v2958_v10 }
 0x5a4   :  { %1426 = vmatpush1.bf16.msra.mxu0 %v2961_v32  ;;  %1467 = vmatpush1.bf16.msra.mxu1 %v2964_v23 }
 0x5a5   :  { %1427 = vmatprep.subr.bf16.mxu0 %v2967_v16  ;;  %1468 = vmatprep.subr.bf16.mxu1 %v2970_v15 }
 0x5a8   :  { %1428 = vmatpush1.bf16.msra.mxu0 %v2973_v38  ;;  %1469 = vmatpush1.bf16.msra.mxu1 %v2976_v39 }
 0x5a9   :  { %1429 = vmatprep.subr.bf16.mxu0 %v2979_v40  ;;  %1470 = vmatprep.subr.bf16.mxu1 %v2982_v41 }
 0x5ac   :  { %1430 = vmatpush1.bf16.msra.mxu0 %v2589_v58  ;;  %1471 = vmatpush1.bf16.msra.mxu1 %v2593_v59 }
 0x5ad   :  { %1431 = vmatprep.subr.bf16.mxu0 %v2597_v60  ;;  %1472 = vmatprep.subr.bf16.mxu1 %v2599_v61  ;;  %v3123_v60 = vld [vmem:[#allocation35_spill] sm:$0xff] }
 0x5b0   :  { %1432 = vmatpush1.bf16.msra.mxu0 %v2605_v63  ;;  %1473 = vmatpush1.bf16.msra.mxu1 %v2607_v1 }
 0x5b1   :  { %1433 = vmatprep.subr.bf16.mxu0 %v2611_v2  ;;  %1474 = vmatprep.subr.bf16.mxu1 %v2613_v3 }
 0x5b4   :  { %1434 = vmatpush1.bf16.msra.mxu0 %v2617_v4  ;;  %1475 = vmatpush1.bf16.msra.mxu1 %v2619_v5 }
 0x5b5   :  { %1531 = vmatprep.subr.bf16.mxu0 %v2909_v36  ;;  %1572 = vmatprep.subr.bf16.mxu1 %v2912_v37 }
 0x66a   :  { %v1341_v58 = vpop.f32.mrb[36].mxu0  ;;  %v1382_v59 = vpop.f32.mrb[36].mxu1 }
 0x66b   :  { %v1389_v61 = vadd.f32 %v1341_v58, %v3123_v60  ;;  %v1391_v63 = vadd.f32 %v1382_v59, %v3124_v42  ;;  %v1343_v43 = vpop.f32.mrb[37].mxu0  ;;  %v1384_v1 = vpop.f32.mrb[37].mxu1 }
 0x66c   :  { %v1390_v2 = vadd.f32 %v1343_v43, %v3125_v45  ;;  %v1392_v3 = vadd.f32 %v1384_v1, %v3126_v46  ;;  %v1345_v47 = vpop.f32.mrb[38].mxu0  ;;  %v1386_v4 = vpop.f32.mrb[38].mxu1 }
 0x66d   :  { %v1393_v48 = vmul.f32 0.5, %v1389_v61  ;;  %v1346_v5 = vpop.f32.mrb[39].mxu0  ;;  %v1387_v49 = vpop.f32.mrb[39].mxu1 }
 0x66e   :  { %v1397_v36 = vmul.f32 0.5, %v1390_v2  ;;  %v1402_v37 = vmul.f32 0.5, %v1392_v3  ;;  %v2029_v49 = vld [vmem:[#allocation14] sm:$0xff]  }
 0x66f   :  { %2087 = vtanh.f32 %v1393_v48 }
 0x670   :  { %2089 = vtanh.f32 %v1397_v36  ;;  %v2370_v36 = vmov 0.0  }
 0x671   :  { %2091 = vtanh.f32 %v1391_v63 }
 0x672   :  { %2093 = vtanh.f32 %v1402_v37  ;;  %v2030_v37 = vld [vmem:[#allocation14 + $0x8] sm:$0xff]  }
 0x679   :  { %v2088_v50 = vpop.eup %2087 }
 0x67a   :  { %v2090_v51 = vpop.eup %2089  ;;  %v1395_v52 = vmul.f32 0.5, %v2088_v50  ;;  %v2031_v50 = vld [vmem:[#allocation14 + $0x10] sm:$0xff]  }
 0x67b   :  { %v1399_v54 = vmul.f32 0.5, %v2090_v51  ;;  %v2092_v56 = vpop.eup %2091  ;;  %v2032_v51 = vld [vmem:[#allocation14 + $0x18] sm:$0xff]  }
 0x67c   :  { %v1396_v55 = vadd.f32 0.5, %v1395_v52  ;;  %v2094_v19 = vpop.eup %2093  ;;  %v2033_v52 = vld [vmem:[#allocation14 + $0x20] sm:$0xff]  }
 0x67d   :  { %v1400_v57 = vadd.f32 0.5, %v1399_v54  ;;  %v1404_v20 = vmul.f32 0.5, %v2094_v19  ;;  %v2034_v54 = vld [vmem:[#allocation14 + $0x28] sm:$0xff]  }
 0x67e   :  { %v1407_v31 = vmul.f32 %v2092_v56, %v1396_v55  ;;  %v2035_v55 = vld [vmem:[#allocation14 + $0x30] sm:$0xff]   ;;  %v2036_v56 = vld [vmem:[#allocation14 + $0x38] sm:$0xff]   ;;  %v3132_v19 = vld [vmem:[#allocation44_spill] sm:$0xff] }
 0x67f   :  { %v1406_v17 = vmul.f32 %v1400_v57, %v2920_v25  ;;  %v1405_v0 = vadd.f32 0.5, %v1404_v20  ;;  %v2141_v25 = vld [vmem:[#allocation13 + $0xc4] ss:$16 sps:$4 sm:$0xff]  }
 0x681   :  { %v3002_v18 = vadd.f32 %v1407_v31, %v1406_v17  ;;  %v3131_v17 = vld [vmem:[#allocation43_spill] sm:$0xff] }
 0x683   :  { %2095 = vtanh.f32 %v3002_v18 }
 0x68d   :  { %v2096_v21 = vpop.eup %2095 }
 0x68e   :  { %v1410_v22 = vmul.f32 %v2096_v21, %v1405_v0 }
 0x690   :  { %v1418_v28 = vpack.c.bf16 %v1410_v22, %v1410_v22  ;;  %v3133_v22 = vld [vmem:[#allocation45_spill] sm:$0xff] }
 0x692   :  { %1452 = vmatmul.mubr.bf16.vlgmr.msra.gmra.mrb[40].mxu0 %v1418_v28  ;;  %1493 = vmatmul.mubr.bf16.vlgmr.msra.gmra.mrb[40].mxu1 %v1418_v28 }
 0x693   :  { %1532 = vmatpush1.bf16.msra.mxu0 %v2923_v12  ;;  %1573 = vmatpush1.bf16.msra.mxu1 %v2926_v53  ;;  %v2148_v12 = vld [vmem:[#allocation13 + $0xe8] ss:$16 sps:$4 sm:$0xff]  }
 0x694   :  { %1533 = vmatprep.subr.bf16.mxu0 %v2929_v29  ;;  %1574 = vmatprep.subr.bf16.mxu1 %v2932_v44  ;;  %v3127_v44 = vld [vmem:[#allocation39_spill] sm:$0xff] }
 0x695   :  { %1563 = vmatprep.mubr.bf16.mxu0 %v3113_v14  ;;  %1604 = vmatprep.mubr.bf16.mxu1 %v3113_v14  ;;  %v2139_v14 = vld [vmem:[#allocation13 + $0xa0] ss:$16 sps:$4 sm:$0xff]  }
 0x697   :  { %1534 = vmatpush1.bf16.msra.mxu0 %v2937_v6  ;;  %1575 = vmatpush1.bf16.msra.mxu1 %v2940_v30  ;;  %v3128_v30 = vld [vmem:[#allocation40_spill] sm:$0xff] }
 0x698   :  { %1535 = vmatprep.subr.bf16.mxu0 %v2943_v11  ;;  %1576 = vmatprep.subr.bf16.mxu1 %v2946_v7 }
 0x69b   :  { %1536 = vmatpush1.bf16.msra.mxu0 %v2949_v9  ;;  %1577 = vmatpush1.bf16.msra.mxu1 %v2952_v13  ;;  %v3129_v13 = vld [vmem:[#allocation41_spill] sm:$0xff] }
 0x69c   :  { %1537 = vmatprep.subr.bf16.mxu0 %v2955_v24  ;;  %1578 = vmatprep.subr.bf16.mxu1 %v2958_v10  ;;  %v3130_v10 = vld [vmem:[#allocation42_spill] sm:$0xff] }
 0x69f   :  { %1538 = vmatpush1.bf16.msra.mxu0 %v2961_v32  ;;  %1579 = vmatpush1.bf16.msra.mxu1 %v2964_v23 }
 0x6a0   :  { %1539 = vmatprep.subr.bf16.mxu0 %v2967_v16  ;;  %1580 = vmatprep.subr.bf16.mxu1 %v2970_v15 }
 0x6a3   :  { %1540 = vmatpush1.bf16.msra.mxu0 %v2973_v38  ;;  %1581 = vmatpush1.bf16.msra.mxu1 %v2976_v39 }
 0x6a4   :  { %1541 = vmatprep.subr.bf16.mxu0 %v2979_v40  ;;  %1582 = vmatprep.subr.bf16.mxu1 %v2982_v41 }
 0x6a7   :  { %1542 = vmatpush1.bf16.msra.mxu0 %v2139_v14  ;;  %1583 = vmatpush1.bf16.msra.mxu1 %v2140_v26  ;;  %v3134_v14 = vld [vmem:[#allocation46_spill] sm:$0xff] }
 0x6a8   :  { %1543 = vmatprep.subr.bf16.mxu0 %v2141_v25  ;;  %1584 = vmatprep.subr.bf16.mxu1 %v2142_v62 }
 0x6ab   :  { %1544 = vmatpush1.bf16.msra.mxu0 %v2143_v27  ;;  %1585 = vmatpush1.bf16.msra.mxu1 %v2144_v8 }
 0x6ac   :  { %1545 = vmatprep.subr.bf16.mxu0 %v2145_v35  ;;  %1586 = vmatprep.subr.bf16.mxu1 %v2146_v33 }
 0x6af   :  { %1546 = vmatpush1.bf16.msra.mxu0 %v2147_v34  ;;  %1587 = vmatpush1.bf16.msra.mxu1 %v2148_v12 }
 0x6b0   :  { %1893 = vmatprep.subr.bf16.mxu0 %v2370_v36 }
 0x765   :  { %v1453_v53 = vpop.f32.mrb[40].mxu0  ;;  %v1494_v29 = vpop.f32.mrb[40].mxu1 }
 0x766   :  { %v1501_v6 = vadd.f32 %v1453_v53, %v3127_v44  ;;  %v1503_v11 = vadd.f32 %v1494_v29, %v3128_v30  ;;  %v1455_v7 = vpop.f32.mrb[41].mxu0  ;;  %v1496_v9 = vpop.f32.mrb[41].mxu1 }
 0x767   :  { %v1502_v24 = vadd.f32 %v1455_v7, %v3129_v13  ;;  %v1504_v32 = vadd.f32 %v1496_v9, %v3130_v10  ;;  %v1457_v23 = vpop.f32.mrb[42].mxu0  ;;  %v1498_v16 = vpop.f32.mrb[42].mxu1 }
 0x768   :  { %v1505_v15 = vmul.f32 0.5, %v1501_v6  ;;  %v1458_v38 = vpop.f32.mrb[43].mxu0  ;;  %v1499_v39 = vpop.f32.mrb[43].mxu1 }
 0x769   :  { %v1509_v40 = vmul.f32 0.5, %v1502_v24  ;;  %v1514_v41 = vmul.f32 0.5, %v1504_v32 }
 0x76a   :  { %2097 = vtanh.f32 %v1505_v15 }
 0x76b   :  { %2099 = vtanh.f32 %v1509_v40 }
 0x76c   :  { %2101 = vtanh.f32 %v1503_v11 }
 0x76d   :  { %2103 = vtanh.f32 %v1514_v41 }
 0x774   :  { %v2098_v58 = vpop.eup %2097 }
 0x775   :  { %v2100_v59 = vpop.eup %2099  ;;  %v1507_v60 = vmul.f32 0.5, %v2098_v58 }
 0x776   :  { %v1511_v61 = vmul.f32 0.5, %v2100_v59  ;;  %v2102_v63 = vpop.eup %2101 }
 0x777   :  { %v1508_v42 = vadd.f32 0.5, %v1507_v60  ;;  %v2104_v46 = vpop.eup %2103 }
 0x778   :  { %v1512_v43 = vadd.f32 0.5, %v1511_v61  ;;  %v1516_v3 = vmul.f32 0.5, %v2104_v46 }
 0x779   :  { %v1519_v1 = vmul.f32 %v2102_v63, %v1508_v42 }
 0x77a   :  { %v1518_v45 = vmul.f32 %v1512_v43, %v3002_v18  ;;  %v1517_v47 = vadd.f32 0.5, %v1516_v3 }
 0x77c   :  { %v3032_v2 = vadd.f32 %v1519_v1, %v1518_v45 }
 0x77e   :  { %2105 = vtanh.f32 %v3032_v2 }
 0x788   :  { %v2106_v4 = vpop.eup %2105 }
 0x789   :  { %v1522_v48 = vmul.f32 %v2106_v4, %v1517_v47 }
 0x78b   :  { %v1530_v5 = vpack.c.bf16 %v1522_v48, %v1522_v48 }
 0x78d   :  { %1564 = vmatmul.mubr.bf16.vlgmr.msra.gmra.mrb[44].mxu0 %v1530_v5  ;;  %1605 = vmatmul.mubr.bf16.vlgmr.msra.gmra.mrb[44].mxu1 %v1530_v5 }
 0x78e   :  { %1894 = vmatpush3.bf16.msra.mxu0 %v2029_v49  ;;  %1909 = vmatprep.mubr.msk.bf16.mxu0 %vm2371_vm0, %v2370_v36 }
 0x78f   :  { %1895 = vmatprep.subr.bf16.mxu0 %v2370_v36 }
 0x792   :  { %1896 = vmatpush3.bf16.msra.mxu0 %v2030_v37 }
 0x793   :  { %1897 = vmatprep.subr.bf16.mxu0 %v2370_v36 }
 0x796   :  { %1898 = vmatpush3.bf16.msra.mxu0 %v2031_v50 }
 0x797   :  { %1899 = vmatprep.subr.bf16.mxu0 %v2370_v36 }
 0x79a   :  { %1900 = vmatpush3.bf16.msra.mxu0 %v2032_v51 }
 0x79b   :  { %1901 = vmatprep.subr.bf16.mxu0 %v2370_v36 }
 0x79e   :  { %1902 = vmatpush3.bf16.msra.mxu0 %v2033_v52 }
 0x79f   :  { %1903 = vmatprep.subr.bf16.mxu0 %v2370_v36 }
 0x7a2   :  { %1904 = vmatpush3.bf16.msra.mxu0 %v2034_v54 }
 0x7a3   :  { %1905 = vmatprep.subr.bf16.mxu0 %v2370_v36 }
 0x7a6   :  { %1906 = vmatpush3.bf16.msra.mxu0 %v2035_v55 }
 0x7a7   :  { %1907 = vmatprep.subr.bf16.mxu0 %v2370_v36 }
 0x7aa   :  { %1908 = vmatpush3.bf16.msra.mxu0 %v2036_v56 }
 0x860   :  { %v1565_v57 = vpop.f32.mrb[44].mxu0  ;;  %v1606_v31 = vpop.f32.mrb[44].mxu1 }
 0x861   :  { %v1613_v18 = vadd.f32 %v1565_v57, %v3131_v17  ;;  %v1615_v20 = vadd.f32 %v1606_v31, %v3132_v19  ;;  %v1567_v0 = vpop.f32.mrb[45].mxu0  ;;  %v1608_v21 = vpop.f32.mrb[45].mxu1 }
 0x862   :  { %v1614_v28 = vadd.f32 %v1567_v0, %v3133_v22  ;;  %v1616_v26 = vadd.f32 %v1608_v21, %v3134_v14  ;;  %v1569_v25 = vpop.f32.mrb[46].mxu0  ;;  %v1610_v62 = vpop.f32.mrb[46].mxu1 }
 0x863   :  { %v1617_v27 = vmul.f32 0.5, %v1613_v18  ;;  %v1570_v8 = vpop.f32.mrb[47].mxu0  ;;  %v1611_v35 = vpop.f32.mrb[47].mxu1 }
 0x864   :  { %v1621_v33 = vmul.f32 0.5, %v1614_v28  ;;  %v1626_v34 = vmul.f32 0.5, %v1616_v26 }
 0x865   :  { %2107 = vtanh.f32 %v1617_v27 }
 0x866   :  { %2109 = vtanh.f32 %v1621_v33 }
 0x867   :  { %2111 = vtanh.f32 %v1615_v20 }
 0x868   :  { %2113 = vtanh.f32 %v1626_v34 }
 0x86f   :  { %v2108_v12 = vpop.eup %2107 }
 0x870   :  { %v2110_v53 = vpop.eup %2109  ;;  %v1619_v29 = vmul.f32 0.5, %v2108_v12 }
 0x871   :  { %v1623_v44 = vmul.f32 0.5, %v2110_v53  ;;  %v2112_v30 = vpop.eup %2111 }
 0x872   :  { %v1620_v6 = vadd.f32 0.5, %v1619_v29  ;;  %v2114_v24 = vpop.eup %2113 }
 0x873   :  { %v1624_v11 = vadd.f32 0.5, %v1623_v44  ;;  %v1628_v10 = vmul.f32 0.5, %v2114_v24 }
 0x874   :  { %v1631_v7 = vmul.f32 %v2112_v30, %v1620_v6 }
 0x875   :  { %v1630_v9 = vmul.f32 %v1624_v11, %v3032_v2  ;;  %v1629_v32 = vadd.f32 0.5, %v1628_v10 }
 0x877   :  { %v1632_v13 = vadd.f32 %v1631_v7, %v1630_v9 }
 0x879   :  { %2115 = vtanh.f32 %v1632_v13  ;;  %1641 = vst [vmem:[#allocation19] sm:$0xff] %v1632_v13 }
 0x883   :  { %v2116_v23 = vpop.eup %2115 }
 0x884   :  { %v1634_v16 = vmul.f32 %v2116_v23, %v1629_v32 }
 0x886   :  { %1640 = vst [vmem:[#allocation17] sm:$0xff] %v1634_v16  ;;  %v1658_v15 = vpack.c.bf16 %v1634_v16, %v1634_v16 }
 0x888   :  { %1910 = vmatmul.mubr.bf16.vlgmr.msra.gmra.mrb[48].mxu0 %v1658_v15 }
 0x889   :  { %2292 = shalt.err (!%p2289_p10)
}
 0x88a   :  { %s2293_s28 = scalar_lea.hbm %s3088_s9, 128 }
 0x88b   :  { %p2294_p11 = scmp.ne.s32.totalorder %s3088_s9, %s2293_s28  ;;  %p2297_p12 = scmp.lt.u32.totalorder %s2293_s28, %s3088_s9 }
 0x88d   :  { %p2299_p13 = pnand %p2297_p12, %p2294_p11 }
 0x88f   :  { %2302 = shalt.err (!%p2299_p13)
}
 0x890   :  { %1774 = dma.vmem_to_hbm [thread:$0]  %s1772_s3, 128, %s3088_s9, [#allocation18]  }
 0x891   :  { %s2373_s12 = smov [#allocation19]  }
 0x892   :  { %s1781_s18 = sshll.u32 %s2373_s12, 4  ;;  %s1782_s18 = int_to_ptr.vmem [resolvable:$true] %s1781_s18 }
 0x893   :  { %s2303_s19 = scalar_lea.vmem %s1782_s18, 128  ;;  %p2308_p1 = scmp.lt.s32.totalorder %s1782_s18, %s1782_s18 }
 0x894   :  { %p2304_p0 = scmp.ne.s32.totalorder %s1782_s18, %s2303_s19  ;;  %p2309_p2 = scmp.lt.s32.totalorder %s2303_s19, %s2303_s19 }
 0x896   :  { %p2310_p3 = por %p2309_p2, %p2308_p1 }
 0x898   :  { %p2311_p4 = pnand %p2310_p3, %p2304_p0 }
 0x89a   :  { %2314 = shalt.err (!%p2311_p4)
}
 0x89b   :  { %s2315_s23 = scalar_lea.hbm %s3089_s10, 128 }
 0x89c   :  { %p2316_p5 = scmp.ne.s32.totalorder %s3089_s10, %s2315_s23  ;;  %p2319_p6 = scmp.lt.u32.totalorder %s2315_s23, %s3089_s10 }
 0x89e   :  { %p2321_p7 = pnand %p2319_p6, %p2316_p5 }
 0x8a0   :  { %2324 = shalt.err (!%p2321_p7)
}
 0x8a1   :  { %1784 = dma.vmem_to_hbm [thread:$0]  %s1782_s18, 128, %s3089_s10, [#allocation18]   ;;  %v1875_v38 = vld [vmem:[%s3086_s7] ss:$0 sm:$0xff] }
 0x8a2   :  { %s2374_s6 = smov [#allocation16]  }
 0x8a3   :  { %s1761_s14 = sshll.u32 %s2374_s6, 4  ;;  %s1762_s14 = int_to_ptr.vmem [resolvable:$true] %s1761_s14 }
 0x8a4   :  { %s2325_s5 = scalar_lea.vmem %s1762_s14, 128  ;;  %p2330_p9 = scmp.lt.s32.totalorder %s1762_s14, %s1762_s14 }
 0x8a5   :  { %p2326_p8 = scmp.ne.s32.totalorder %s1762_s14, %s2325_s5  ;;  %p2331_p10 = scmp.lt.s32.totalorder %s2325_s5, %s2325_s5 }
 0x8a7   :  { %p2332_p11 = por %p2331_p10, %p2330_p9 }
 0x8a9   :  { %p2333_p12 = pnand %p2332_p11, %p2326_p8 }
 0x95b   :  { %v1748_v39 = vpop.f32.mrb[48].mxu0 }
 0x95c   :  { %v1749_v40 = vadd.f32 %v1875_v38, %v1748_v39  ;;  %v1911_v41 = vpop.f32.mrb[49].mxu0 }
 0x95d   :  { %v1751_v58 = vpop.f32.mrb[50].mxu0 }
 0x95e   :  { %1754 = vst [vmem:[#allocation16] sm:$0xff] %v1749_v40  ;;  %v1912_v59 = vpop.f32.mrb[51].mxu0 }
 0x95f   :  { %2336 = shalt.err (!%p2333_p12)
}
 0x960   :  { %s2337_s7 = scalar_lea.hbm %s3087_s8, 128 }
 0x961   :  { %p2338_p13 = scmp.ne.s32.totalorder %s3087_s8, %s2337_s7  ;;  %p2341_p0 = scmp.lt.u32.totalorder %s2337_s7, %s3087_s8 }
 0x963   :  { %p2343_p1 = pnand %p2341_p0, %p2338_p13 }
 0x965   :  { %2346 = shalt.err (!%p2343_p1)
}
 0x966   :  { %1764 = dma.vmem_to_hbm [thread:$0]  %s1762_s14, 128, %s3087_s8, [#allocation7]  }
 0x967   :  { %2355 = dma.done.wait [#allocation7], 128  }
 0x968   :  { %2356 = vsyncadd [#allocation7], 4294967168 }
 0x969   :  { %2357 = dma.done.wait [#allocation18], 256  }
 0x96a   :  { %2358 = vsyncadd [#allocation18], 4294967040 }
 0x96b   :  { %1794 = vsyncpa [#allocation6], 1 }
 0x96c   :  { %1795 = vsyncpa [#allocation9], 1 }
 0x96d   :  { %1796 = vsyncpa [#allocation12], 1 }
 0x96e   :  { %1797 = vsyncpa [#allocation15], 1 }
 0x96f   :  { %1798 = vsyncpa [#allocation7], 1 }
 0x970   :  { %1799 = vsyncpa [#allocation18], 1 }

</bundles_post_ra>
